<compile_context>
chip_gen: v5e
topology: v5e:2x2
jax: 0.10.0
libtpu: 0.0.40
codegen_flags: <defaults>
</compile_context>

<pallas_src>
import functools

import jax
import jax.numpy as jnp
from jax.experimental import pallas as pl
from jax.experimental.pallas import tpu as pltpu


# ----------------------------------------------------------------------------
# Pallas kernels (feature maps transposed: [C, M], voxels on the lane axis)
# ----------------------------------------------------------------------------

def _conv_bn_stats_kernel(cnt_ref, p_ref, w_ref, m_ref, y_ref, s_ref, q_ref):
    """Fused stage-0: conv-as-matmul (bias folded into weights, bf16 inputs,
    f32 accumulate) + active-mask multiply + per-channel masked sum / sum-of-
    squares accumulation for BatchNorm.  Fully inactive tiles skip the MXU."""
    i = pl.program_id(0)

    @pl.when(i == 0)
    def _():
        s_ref[...] = jnp.zeros_like(s_ref)
        q_ref[...] = jnp.zeros_like(q_ref)

    @pl.when(cnt_ref[i] > 0)
    def _():
        acc = jnp.dot(w_ref[...], p_ref[...], preferred_element_type=jnp.float32)
        y = acc * m_ref[...]                       # [Cout, tm] * [1, tm]
        y_ref[...] = y.astype(y_ref.dtype)         # bf16 store (halved HBM traffic)
        # inactive voxels are already zero, so these sums are over active voxels
        s_ref[...] += jnp.sum(y, axis=1, keepdims=True)
        q_ref[...] += jnp.sum(y * y, axis=1, keepdims=True)

    @pl.when(cnt_ref[i] == 0)
    def _():
        y_ref[...] = jnp.zeros_like(y_ref)


def _bn_relu_mask_kernel(cnt_ref, x_ref, m_ref, scale_ref, shift_ref, o_ref):
    """Stage-0 second pass: normalize + affine (pre-folded scale/shift) + ReLU
    + active-mask multiply.  Lane-dense [C, tm] blocks, bf16 in / f32 out."""
    i = pl.program_id(0)

    @pl.when(cnt_ref[i] > 0)
    def _():
        y = x_ref[...].astype(jnp.float32) * scale_ref[...] + shift_ref[...]
        o_ref[...] = jnp.maximum(y, 0.0) * m_ref[...]

    @pl.when(cnt_ref[i] == 0)
    def _():
        o_ref[...] = jnp.zeros_like(o_ref)


def _conv_ln_relu_mask_kernel(cnt_ref, p_ref, w_ref, m_ref, g_ref, b_ref, o_ref,
                              *, eps):
    """Fused stage-1: conv-as-matmul + per-voxel LayerNorm over channels
    (channel axis = sublanes) + affine + ReLU + active-mask multiply."""
    i = pl.program_id(0)

    @pl.when(cnt_ref[i] > 0)
    def _():
        x = jnp.dot(w_ref[...], p_ref[...], preferred_element_type=jnp.float32)
        mu = jnp.mean(x, axis=0, keepdims=True)
        var = jnp.mean((x - mu) ** 2, axis=0, keepdims=True)
        y = (x - mu) * jax.lax.rsqrt(var + eps) * g_ref[...] + b_ref[...]
        o_ref[...] = jnp.maximum(y, 0.0) * m_ref[...]

    @pl.when(cnt_ref[i] == 0)
    def _():
        o_ref[...] = jnp.zeros_like(o_ref)


# ----------------------------------------------------------------------------
# pallas_call wrappers
# ----------------------------------------------------------------------------

_VMEM_LIMIT = 64 * 1024 * 1024


def _col_tile(m):
    # large lane-axis tiles to amortize the ~0.35us per-grid-step overhead
    for t in (4096, 2048, 1024, 512, 256, 128):
        if m % t == 0:
            return t
    return m   # "full dim" block for awkward sizes


def _tile_counts(mask_lanes, tm):
    # per-tile count of active voxels; prefetched into SMEM so dead tiles skip work
    return mask_lanes.reshape(-1, tm).sum(axis=1).astype(jnp.int32)


def conv_bn_stage0_call(patches_t, w_packed, mask_lanes):
    k, m = patches_t.shape
    cout = w_packed.shape[0]
    tm = _col_tile(m)
    nt = m // tm
    cnt = _tile_counts(mask_lanes, tm)
    grid_spec = pltpu.PrefetchScalarGridSpec(
        num_scalar_prefetch=1,
        grid=(nt,),
        in_specs=[
            pl.BlockSpec((k, tm), lambda i, c: (0, i)),
            pl.BlockSpec((cout, k), lambda i, c: (0, 0)),
            pl.BlockSpec((1, tm), lambda i, c: (0, i)),
        ],
        out_specs=(
            pl.BlockSpec((cout, tm), lambda i, c: (0, i)),
            pl.BlockSpec((cout, 1), lambda i, c: (0, 0)),
            pl.BlockSpec((cout, 1), lambda i, c: (0, 0)),
        ),
    )
    return pl.pallas_call(
        _conv_bn_stats_kernel,
        out_shape=(
            jax.ShapeDtypeStruct((cout, m), jnp.bfloat16),   # conv output (pre-BN)
            jax.ShapeDtypeStruct((cout, 1), jnp.float32),    # masked sum
            jax.ShapeDtypeStruct((cout, 1), jnp.float32),    # masked sum of squares
        ),
        grid_spec=grid_spec,
        compiler_params=pltpu.CompilerParams(
            dimension_semantics=("arbitrary",),   # stats accumulate across tiles
            vmem_limit_bytes=_VMEM_LIMIT),
    )(cnt, patches_t, w_packed, mask_lanes)


def bn_relu_mask_call(x_cm, mask_lanes, scale, shift):
    c, m = x_cm.shape
    tm = _col_tile(m)
    nt = m // tm
    cnt = _tile_counts(mask_lanes, tm)
    grid_spec = pltpu.PrefetchScalarGridSpec(
        num_scalar_prefetch=1,
        grid=(nt,),
        in_specs=[
            pl.BlockSpec((c, tm), lambda i, cc: (0, i)),
            pl.BlockSpec((1, tm), lambda i, cc: (0, i)),
            pl.BlockSpec((c, 1), lambda i, cc: (0, 0)),
            pl.BlockSpec((c, 1), lambda i, cc: (0, 0)),
        ],
        out_specs=pl.BlockSpec((c, tm), lambda i, cc: (0, i)),
    )
    return pl.pallas_call(
        _bn_relu_mask_kernel,
        out_shape=jax.ShapeDtypeStruct((c, m), jnp.float32),
        grid_spec=grid_spec,
        compiler_params=pltpu.CompilerParams(
            dimension_semantics=("parallel",),
            vmem_limit_bytes=_VMEM_LIMIT),
    )(cnt, x_cm, mask_lanes, scale, shift)


def conv_ln_stage1_call(patches_t, w_packed, mask_lanes, gamma, beta, eps=1e-6):
    k, m = patches_t.shape
    cout = w_packed.shape[0]
    tm = _col_tile(m)
    nt = m // tm
    cnt = _tile_counts(mask_lanes, tm)
    grid_spec = pltpu.PrefetchScalarGridSpec(
        num_scalar_prefetch=1,
        grid=(nt,),
        in_specs=[
            pl.BlockSpec((k, tm), lambda i, c: (0, i)),
            pl.BlockSpec((cout, k), lambda i, c: (0, 0)),
            pl.BlockSpec((1, tm), lambda i, c: (0, i)),
            pl.BlockSpec((cout, 1), lambda i, c: (0, 0)),
            pl.BlockSpec((cout, 1), lambda i, c: (0, 0)),
        ],
        out_specs=pl.BlockSpec((cout, tm), lambda i, c: (0, i)),
    )
    return pl.pallas_call(
        functools.partial(_conv_ln_relu_mask_kernel, eps=eps),
        out_shape=jax.ShapeDtypeStruct((cout, m), jnp.float32),
        grid_spec=grid_spec,
        compiler_params=pltpu.CompilerParams(
            dimension_semantics=("parallel",),
            vmem_limit_bytes=_VMEM_LIMIT),
    )(cnt, patches_t, w_packed, mask_lanes, gamma, beta)


# ----------------------------------------------------------------------------
# JAX glue: patch extraction, mask upsampling, module-level forward
# ----------------------------------------------------------------------------

def extract_patches_3d_t(x_cb, ksize, stride, pad):
    # x_cb: channels-first [C, B, D, H, W]
    # -> transposed bf16 im2col [kd*kh*kw*C + 1, B*Do*Ho*Wo]
    # (the trailing ones-row folds the conv bias into the packed weight matrix).
    # TODO(synk): the overlapping-window conv (no HBM im2col) is not expressible
    # with rectangular BlockSpecs; stride-2 im2col is ~3.4x the input bytes here.
    c, b, d, h, w = x_cb.shape
    kd, kh, kw = ksize
    sd, sh, sw = stride
    pd, ph, pw = pad
    xp = jnp.pad(x_cb, ((0, 0), (0, 0), (pd, pd), (ph, ph), (pw, pw)))
    do = (d + 2 * pd - kd) // sd + 1
    ho = (h + 2 * ph - kh) // sh + 1
    wo = (w + 2 * pw - kw) // sw + 1
    slices = []
    for a in range(kd):
        for bb in range(kh):
            for cc in range(kw):
                slices.append(
                    xp[:, :, a:a + sd * do:sd, bb:bb + sh * ho:sh, cc:cc + sw * wo:sw])
    taps = jnp.stack(slices, axis=0)                  # [27, C, B, Do, Ho, Wo]
    m = b * do * ho * wo
    patches = taps.reshape(kd * kh * kw * c, m)       # row index = tap*C + c
    patches = jnp.concatenate([patches, jnp.ones((1, m), patches.dtype)], axis=0)
    return patches.astype(jnp.bfloat16), (b, do, ho, wo)


def upsample_mask_lanes(mask_coarse, d, h, w):
    # get_active_ex_or_ii: repeat_interleave coarse mask up to (D, H, W),
    # flattened lane-dense as [1, B*D*H*W] (voxels in (b, d, h, w) order).
    b = mask_coarse.shape[0]
    md, mh, mw = mask_coarse.shape[2:]
    m = mask_coarse[:, 0]
    m = jnp.repeat(m, d // md, axis=1)
    m = jnp.repeat(m, h // mh, axis=2)
    m = jnp.repeat(m, w // mw, axis=3)
    return m.reshape(1, b * d * h * w).astype(jnp.float32)


def pack_weight(w_t, bias):
    # [Cout, K] weights + [Cout] bias -> bf16 [Cout, K+1] matching the ones-row
    return jnp.concatenate([w_t, bias[:, None]], axis=1).astype(jnp.bfloat16)


@jax.jit
def sparse_encoder_forward(x_ncdhw, mask_coarse, params):
    """Returns list of hierarchical feature maps in NCDHW (PyTorch convention)."""
    # channels-first flat layout [C, B, D, H, W] kept end-to-end
    x = jnp.transpose(x_ncdhw, (1, 0, 2, 3, 4)).astype(jnp.float32)
    feats = []

    # ---- stage 0: SparseConv3d -> SparseBatchNorm3d -> ReLU -> SparseMaxPooling
    p0, (b, d0, h0, w0) = extract_patches_3d_t(x, (3, 3, 3), (2, 2, 2), (1, 1, 1))
    m0 = upsample_mask_lanes(mask_coarse, d0, h0, w0)
    w0p = pack_weight(params["w0"], params["b0"])
    y0, s0, q0 = conv_bn_stage0_call(p0, w0p, m0)

    # BatchNorm over ACTIVE voxels only: tiny per-channel math in JAX.
    # (E[x^2]-E[x]^2 in f32 with var clamped >= 0; running stats do not affect output.)
    n_act = jnp.maximum(jnp.sum(m0), 1.0)
    mean = s0 / n_act
    var = jnp.maximum(q0 / n_act - mean * mean, 0.0)
    scale = params["g0"][:, None] * jax.lax.rsqrt(var + 1e-5)
    shift = params["be0"][:, None] - mean * scale
    y0 = bn_relu_mask_call(y0, m0, scale, shift)

    # SparseMaxPooling(k=3, s=1, p=1): dense pool then mask (matches reference).
    # TODO(synk): windowed max stays on lax.reduce_window (overlapping halos not
    # expressible with rectangular BlockSpecs); the mask multiply is left to XLA
    # fusion instead of a separate Pallas HBM round trip.
    c0 = y0.shape[0]
    x5 = y0.reshape(c0, b, d0, h0, w0)                 # free reshape, no transpose
    pooled = jax.lax.reduce_window(
        x5, -jnp.inf, jax.lax.max,
        window_dimensions=(1, 1, 3, 3, 3),
        window_strides=(1, 1, 1, 1, 1),
        padding=((0, 0), (0, 0), (1, 1), (1, 1), (1, 1)))
    pooled = pooled * m0.reshape(1, b, d0, h0, w0)
    feats.append(jnp.transpose(pooled, (1, 0, 2, 3, 4)))          # NCDHW

    # ---- stage 1: SparseConv3d -> SparseConvNeXtLayerNorm(sparse) -> ReLU
    p1, (b, d1, h1, w1) = extract_patches_3d_t(pooled, (3, 3, 3), (2, 2, 2), (1, 1, 1))
    m1 = upsample_mask_lanes(mask_coarse, d1, h1, w1)
    w1p = pack_weight(params["w1"], params["b1"])
    y1 = conv_ln_stage1_call(p1, w1p, m1,
                             params["g1"][:, None], params["be1"][:, None], eps=1e-6)
    c1 = y1.shape[0]
    feats.append(jnp.transpose(y1.reshape(c1, b, d1, h1, w1), (1, 0, 2, 3, 4)))

    return feats


# ----------------------------------------------------------------------------
# main
# ----------------------------------------------------------------------------

if __name__ == "__main__":
    key = jax.random.PRNGKey(0)
    k_x, k_m, k_w0, k_w1 = jax.random.split(key, 4)

    # small shapes consistent with the module's [B, 1, D, H, W] input convention
    B, CIN, D, H, W = 2, 1, 16, 32, 32
    C0, C1 = 8, 16            # scaled-down stand-ins for enc_feat_map_chs
    KVOL = 3 * 3 * 3

    x = jax.random.normal(k_x, (B, CIN, D, H, W), jnp.float32)
    # coarse active mask at the final feature-map resolution (total downsample 4x),
    # shape [B, 1, d, h, w] — same role as the global `_mask` in the reference.
    mask_coarse = (jax.random.uniform(k_m, (B, 1, D // 4, H // 4, W // 4)) > 0.4
                   ).astype(jnp.float32)

    params = {
        # conv weights stored pre-transposed as [Cout, kd*kh*kw*Cin] to match
        # the transposed im2col (tap-major, then cin) ordering; bias kept separate
        # and folded into the packed weight at call time.
        "w0": jax.random.normal(k_w0, (C0, KVOL * CIN), jnp.float32) * 0.1,
        "b0": jnp.zeros((C0,), jnp.float32),
        "g0": jnp.ones((C0,), jnp.float32),
        "be0": jnp.zeros((C0,), jnp.float32),
        "w1": jax.random.normal(k_w1, (C1, KVOL * C0), jnp.float32) * 0.1,
        "b1": jnp.zeros((C1,), jnp.float32),
        "g1": jnp.ones((C1,), jnp.float32),
        "be1": jnp.zeros((C1,), jnp.float32),
    }

    feats = sparse_encoder_forward(x, mask_coarse, params)
    for f in feats:
        jax.block_until_ready(f)
    print("KERNEL_OK")
</pallas_src>

<mosaic_0001>
module attributes {stable_mosaic.version = 11 : i64} {
  func.func @_conv_bn_stats_kernel(%arg0: i32, %arg1: memref<1xi32, #tpu.memory_space<smem>>, %arg2: memref<28x4096xbf16, #tpu.memory_space<vmem>>, %arg3: memref<8x28xbf16, #tpu.memory_space<vmem>>, %arg4: memref<1x4096xf32, #tpu.memory_space<vmem>>, %arg5: memref<8x4096xbf16, #tpu.memory_space<vmem>>, %arg6: memref<8x1xf32, #tpu.memory_space<vmem>>, %arg7: memref<8x1xf32, #tpu.memory_space<vmem>>) attributes {dimension_semantics = [#tpu.dimension_semantics<arbitrary>], iteration_bounds = array<i64: 1>, scalar_prefetch = 1 : i64, scratch_operands = 0 : i64, tpu.core_type = #tpu.core_type<tc>, window_params = [{transform_indices = @transform_0, window_bounds = array<i64: 28, 4096>}, {pipeline_mode = #tpu.pipeline_mode<synchronous>, transform_indices = @transform_1, window_bounds = array<i64: 8, 28>}, {transform_indices = @transform_2, window_bounds = array<i64: 1, 4096>}, {transform_indices = @transform_3, window_bounds = array<i64: 8, 4096>}, {pipeline_mode = #tpu.pipeline_mode<synchronous>, transform_indices = @transform_4, window_bounds = array<i64: 8, 1>}, {pipeline_mode = #tpu.pipeline_mode<synchronous>, transform_indices = @transform_5, window_bounds = array<i64: 8, 1>}]} {
    %c0_i32 = arith.constant 0 : i32
    %0 = arith.cmpi eq, %arg0, %c0_i32 : i32
    %1 = arith.extui %0 : i1 to i32
    %c0_i32_0 = arith.constant 0 : i32
    %2 = arith.cmpi ne, %1, %c0_i32_0 : i32
    scf.if %2 {
      %cst = arith.constant 0.000000e+00 : f32
      %13 = vector.broadcast %cst : f32 to vector<8x1xf32>
      %c0 = arith.constant 0 : index
      %c0_5 = arith.constant 0 : index
      %14 = vector.load %arg6[%c0, %c0_5] : memref<8x1xf32, #tpu.memory_space<vmem>>, vector<8x1xf32>
      tpu.vector_store %arg6[%c0, %c0_5], %13 {strides = array<i32>} : memref<8x1xf32, #tpu.memory_space<vmem>>, vector<8x1xf32>,
      %cst_6 = arith.constant 0.000000e+00 : f32
      %15 = vector.broadcast %cst_6 : f32 to vector<8x1xf32>
      %c0_7 = arith.constant 0 : index
      %c0_8 = arith.constant 0 : index
      %16 = vector.load %arg7[%c0_7, %c0_8] : memref<8x1xf32, #tpu.memory_space<vmem>>, vector<8x1xf32>
      tpu.vector_store %arg7[%c0_7, %c0_8], %15 {strides = array<i32>} : memref<8x1xf32, #tpu.memory_space<vmem>>, vector<8x1xf32>,
    } else {
    }
    %3 = arith.index_cast %arg0 : i32 to index
    %4 = memref.load %arg1[%3] : memref<1xi32, #tpu.memory_space<smem>>
    %c0_i32_1 = arith.constant 0 : i32
    %5 = arith.cmpi sgt, %4, %c0_i32_1 : i32
    %6 = arith.extui %5 : i1 to i32
    %c0_i32_2 = arith.constant 0 : i32
    %7 = arith.cmpi ne, %6, %c0_i32_2 : i32
    scf.if %7 {
      %c0 = arith.constant 0 : index
      %c0_5 = arith.constant 0 : index
      %13 = vector.load %arg3[%c0, %c0_5] : memref<8x28xbf16, #tpu.memory_space<vmem>>, vector<8x28xbf16>
      %c0_6 = arith.constant 0 : index
      %c0_7 = arith.constant 0 : index
      %14 = vector.load %arg2[%c0_6, %c0_7] : memref<28x4096xbf16, #tpu.memory_space<vmem>>, vector<28x4096xbf16>
      %cst = arith.constant dense<0.000000e+00> : vector<8x4096xf32>
      %15 = tpu.matmul %13, %14, %cst {dimension_numbers = #tpu.dot_dimension_numbers<[1], [0], [0], [1], [0, 0, 1, 1], [], []>} : vector<8x28xbf16>, vector<28x4096xbf16>, vector<8x4096xf32> -> vector<8x4096xf32>
      %c0_8 = arith.constant 0 : index
      %c0_9 = arith.constant 0 : index
      %16 = vector.load %arg4[%c0_8, %c0_9] : memref<1x4096xf32, #tpu.memory_space<vmem>>, vector<1x4096xf32>
      %17 = vector.broadcast %16 : vector<1x4096xf32> to vector<8x4096xf32>
      %18 = arith.mulf %15, %17 : vector<8x4096xf32>
      %19 = arith.truncf %18 : vector<8x4096xf32> to vector<8x4096xbf16>
      %c0_10 = arith.constant 0 : index
      %c0_11 = arith.constant 0 : index
      %20 = vector.load %arg5[%c0_10, %c0_11] : memref<8x4096xbf16, #tpu.memory_space<vmem>>, vector<8x4096xbf16>
      tpu.vector_store %arg5[%c0_10, %c0_11], %19 {strides = array<i32>} : memref<8x4096xbf16, #tpu.memory_space<vmem>>, vector<8x4096xbf16>,
      %c0_12 = arith.constant 0 : index
      %c0_13 = arith.constant 0 : index
      %21 = vector.load %arg6[%c0_12, %c0_13] : memref<8x1xf32, #tpu.memory_space<vmem>>, vector<8x1xf32>
      %cst_14 = arith.constant dense<0.000000e+00> : vector<8xf32>
      %22 = vector.multi_reduction <add>, %18, %cst_14 [1] : vector<8x4096xf32> to vector<8xf32>
      %23 = vector.shape_cast %22 : vector<8xf32> to vector<8x1xf32>
      %24 = arith.addf %21, %23 : vector<8x1xf32>
      %c0_15 = arith.constant 0 : index
      %c0_16 = arith.constant 0 : index
      %25 = vector.load %arg6[%c0_15, %c0_16] : memref<8x1xf32, #tpu.memory_space<vmem>>, vector<8x1xf32>
      tpu.vector_store %arg6[%c0_15, %c0_16], %24 {strides = array<i32>} : memref<8x1xf32, #tpu.memory_space<vmem>>, vector<8x1xf32>,
      %c0_17 = arith.constant 0 : index
      %c0_18 = arith.constant 0 : index
      %26 = vector.load %arg7[%c0_17, %c0_18] : memref<8x1xf32, #tpu.memory_space<vmem>>, vector<8x1xf32>
      %27 = arith.mulf %18, %18 : vector<8x4096xf32>
      %cst_19 = arith.constant dense<0.000000e+00> : vector<8xf32>
      %28 = vector.multi_reduction <add>, %27, %cst_19 [1] : vector<8x4096xf32> to vector<8xf32>
      %29 = vector.shape_cast %28 : vector<8xf32> to vector<8x1xf32>
      %30 = arith.addf %26, %29 : vector<8x1xf32>
      %c0_20 = arith.constant 0 : index
      %c0_21 = arith.constant 0 : index
      %31 = vector.load %arg7[%c0_20, %c0_21] : memref<8x1xf32, #tpu.memory_space<vmem>>, vector<8x1xf32>
      tpu.vector_store %arg7[%c0_20, %c0_21], %30 {strides = array<i32>} : memref<8x1xf32, #tpu.memory_space<vmem>>, vector<8x1xf32>,
    } else {
    }
    %8 = arith.index_cast %arg0 : i32 to index
    %9 = memref.load %arg1[%8] : memref<1xi32, #tpu.memory_space<smem>>
    %c0_i32_3 = arith.constant 0 : i32
    %10 = arith.cmpi eq, %9, %c0_i32_3 : i32
    %11 = arith.extui %10 : i1 to i32
    %c0_i32_4 = arith.constant 0 : i32
    %12 = arith.cmpi ne, %11, %c0_i32_4 : i32
    scf.if %12 {
      %cst = arith.constant 0.000000e+00 : bf16
      %13 = vector.broadcast %cst : bf16 to vector<8x4096xbf16>
      %c0 = arith.constant 0 : index
      %c0_5 = arith.constant 0 : index
      %14 = vector.load %arg5[%c0, %c0_5] : memref<8x4096xbf16, #tpu.memory_space<vmem>>, vector<8x4096xbf16>
      tpu.vector_store %arg5[%c0, %c0_5], %13 {strides = array<i32>} : memref<8x4096xbf16, #tpu.memory_space<vmem>>, vector<8x4096xbf16>,
    } else {
    }
    return
  }
  func.func @transform_0(%arg0: i32, %arg1: memref<1xi32, #tpu.memory_space<smem>>) -> (i32, i32) {
    %c0_i32 = arith.constant 0 : i32
    %c0_i32_0 = arith.constant 0 : i32
    return %c0_i32, %arg0 : i32, i32
  }
  func.func @transform_1(%arg0: i32, %arg1: memref<1xi32, #tpu.memory_space<smem>>) -> (i32, i32) {
    %c0_i32 = arith.constant 0 : i32
    %c0_i32_0 = arith.constant 0 : i32
    %c0_i32_1 = arith.constant 0 : i32
    return %c0_i32, %c0_i32_0 : i32, i32
  }
  func.func @transform_2(%arg0: i32, %arg1: memref<1xi32, #tpu.memory_space<smem>>) -> (i32, i32) {
    %c0_i32 = arith.constant 0 : i32
    %c0_i32_0 = arith.constant 0 : i32
    return %c0_i32, %arg0 : i32, i32
  }
  func.func @transform_3(%arg0: i32, %arg1: memref<1xi32, #tpu.memory_space<smem>>) -> (i32, i32) {
    %c0_i32 = arith.constant 0 : i32
    %c0_i32_0 = arith.constant 0 : i32
    return %c0_i32, %arg0 : i32, i32
  }
  func.func @transform_4(%arg0: i32, %arg1: memref<1xi32, #tpu.memory_space<smem>>) -> (i32, i32) {
    %c0_i32 = arith.constant 0 : i32
    %c0_i32_0 = arith.constant 0 : i32
    %c0_i32_1 = arith.constant 0 : i32
    return %c0_i32, %c0_i32_0 : i32, i32
  }
  func.func @transform_5(%arg0: i32, %arg1: memref<1xi32, #tpu.memory_space<smem>>) -> (i32, i32) {
    %c0_i32 = arith.constant 0 : i32
    %c0_i32_0 = arith.constant 0 : i32
    %c0_i32_1 = arith.constant 0 : i32
    return %c0_i32, %c0_i32_0 : i32, i32
  }
}

module attributes {stable_mosaic.version = 11 : i64} {
  func.func @_bn_relu_mask_kernel(%arg0: i32, %arg1: memref<1xi32, #tpu.memory_space<smem>>, %arg2: memref<8x4096xbf16, #tpu.memory_space<vmem>>, %arg3: memref<1x4096xf32, #tpu.memory_space<vmem>>, %arg4: memref<8x1xf32, #tpu.memory_space<vmem>>, %arg5: memref<8x1xf32, #tpu.memory_space<vmem>>, %arg6: memref<8x4096xf32, #tpu.memory_space<vmem>>) attributes {dimension_semantics = [#tpu.dimension_semantics<parallel>], iteration_bounds = array<i64: 1>, scalar_prefetch = 1 : i64, scratch_operands = 0 : i64, tpu.core_type = #tpu.core_type<tc>, window_params = [{transform_indices = @transform_0, window_bounds = array<i64: 8, 4096>}, {transform_indices = @transform_1, window_bounds = array<i64: 1, 4096>}, {pipeline_mode = #tpu.pipeline_mode<synchronous>, transform_indices = @transform_2, window_bounds = array<i64: 8, 1>}, {pipeline_mode = #tpu.pipeline_mode<synchronous>, transform_indices = @transform_3, window_bounds = array<i64: 8, 1>}, {transform_indices = @transform_4, window_bounds = array<i64: 8, 4096>}]} {
    %0 = arith.index_cast %arg0 : i32 to index
    %1 = memref.load %arg1[%0] : memref<1xi32, #tpu.memory_space<smem>>
    %c0_i32 = arith.constant 0 : i32
    %2 = arith.cmpi sgt, %1, %c0_i32 : i32
    %3 = arith.extui %2 : i1 to i32
    %c0_i32_0 = arith.constant 0 : i32
    %4 = arith.cmpi ne, %3, %c0_i32_0 : i32
    scf.if %4 {
      %c0 = arith.constant 0 : index
      %c0_3 = arith.constant 0 : index
      %10 = vector.load %arg2[%c0, %c0_3] : memref<8x4096xbf16, #tpu.memory_space<vmem>>, vector<8x4096xbf16>
      %11 = arith.extf %10 : vector<8x4096xbf16> to vector<8x4096xf32>
      %c0_4 = arith.constant 0 : index
      %c0_5 = arith.constant 0 : index
      %12 = vector.load %arg4[%c0_4, %c0_5] : memref<8x1xf32, #tpu.memory_space<vmem>>, vector<8x1xf32>
      %13 = vector.broadcast %12 : vector<8x1xf32> to vector<8x4096xf32>
      %14 = arith.mulf %11, %13 : vector<8x4096xf32>
      %c0_6 = arith.constant 0 : index
      %c0_7 = arith.constant 0 : index
      %15 = vector.load %arg5[%c0_6, %c0_7] : memref<8x1xf32, #tpu.memory_space<vmem>>, vector<8x1xf32>
      %16 = vector.broadcast %15 : vector<8x1xf32> to vector<8x4096xf32>
      %17 = arith.addf %14, %16 : vector<8x4096xf32>
      %cst = arith.constant 0.000000e+00 : f32
      %18 = vector.broadcast %cst : f32 to vector<8x4096xf32>
      %19 = arith.maximumf %17, %18 : vector<8x4096xf32>
      %c0_8 = arith.constant 0 : index
      %c0_9 = arith.constant 0 : index
      %20 = vector.load %arg3[%c0_8, %c0_9] : memref<1x4096xf32, #tpu.memory_space<vmem>>, vector<1x4096xf32>
      %21 = vector.broadcast %20 : vector<1x4096xf32> to vector<8x4096xf32>
      %22 = arith.mulf %19, %21 : vector<8x4096xf32>
      %c0_10 = arith.constant 0 : index
      %c0_11 = arith.constant 0 : index
      %23 = vector.load %arg6[%c0_10, %c0_11] : memref<8x4096xf32, #tpu.memory_space<vmem>>, vector<8x4096xf32>
      tpu.vector_store %arg6[%c0_10, %c0_11], %22 {strides = array<i32>} : memref<8x4096xf32, #tpu.memory_space<vmem>>, vector<8x4096xf32>,
    } else {
    }
    %5 = arith.index_cast %arg0 : i32 to index
    %6 = memref.load %arg1[%5] : memref<1xi32, #tpu.memory_space<smem>>
    %c0_i32_1 = arith.constant 0 : i32
    %7 = arith.cmpi eq, %6, %c0_i32_1 : i32
    %8 = arith.extui %7 : i1 to i32
    %c0_i32_2 = arith.constant 0 : i32
    %9 = arith.cmpi ne, %8, %c0_i32_2 : i32
    scf.if %9 {
      %cst = arith.constant 0.000000e+00 : f32
      %10 = vector.broadcast %cst : f32 to vector<8x4096xf32>
      %c0 = arith.constant 0 : index
      %c0_3 = arith.constant 0 : index
      %11 = vector.load %arg6[%c0, %c0_3] : memref<8x4096xf32, #tpu.memory_space<vmem>>, vector<8x4096xf32>
      tpu.vector_store %arg6[%c0, %c0_3], %10 {strides = array<i32>} : memref<8x4096xf32, #tpu.memory_space<vmem>>, vector<8x4096xf32>,
    } else {
    }
    return
  }
  func.func @transform_0(%arg0: i32, %arg1: memref<1xi32, #tpu.memory_space<smem>>) -> (i32, i32) {
    %c0_i32 = arith.constant 0 : i32
    %c0_i32_0 = arith.constant 0 : i32
    return %c0_i32, %arg0 : i32, i32
  }
  func.func @transform_1(%arg0: i32, %arg1: memref<1xi32, #tpu.memory_space<smem>>) -> (i32, i32) {
    %c0_i32 = arith.constant 0 : i32
    %c0_i32_0 = arith.constant 0 : i32
    return %c0_i32, %arg0 : i32, i32
  }
  func.func @transform_2(%arg0: i32, %arg1: memref<1xi32, #tpu.memory_space<smem>>) -> (i32, i32) {
    %c0_i32 = arith.constant 0 : i32
    %c0_i32_0 = arith.constant 0 : i32
    %c0_i32_1 = arith.constant 0 : i32
    return %c0_i32, %c0_i32_0 : i32, i32
  }
  func.func @transform_3(%arg0: i32, %arg1: memref<1xi32, #tpu.memory_space<smem>>) -> (i32, i32) {
    %c0_i32 = arith.constant 0 : i32
    %c0_i32_0 = arith.constant 0 : i32
    %c0_i32_1 = arith.constant 0 : i32
    return %c0_i32, %c0_i32_0 : i32, i32
  }
  func.func @transform_4(%arg0: i32, %arg1: memref<1xi32, #tpu.memory_space<smem>>) -> (i32, i32) {
    %c0_i32 = arith.constant 0 : i32
    %c0_i32_0 = arith.constant 0 : i32
    return %c0_i32, %arg0 : i32, i32
  }
}

module attributes {stable_mosaic.version = 11 : i64} {
  func.func @_conv_ln_relu_mask_kernel(%arg0: i32, %arg1: memref<1xi32, #tpu.memory_space<smem>>, %arg2: memref<217x512xbf16, #tpu.memory_space<vmem>>, %arg3: memref<16x217xbf16, #tpu.memory_space<vmem>>, %arg4: memref<1x512xf32, #tpu.memory_space<vmem>>, %arg5: memref<16x1xf32, #tpu.memory_space<vmem>>, %arg6: memref<16x1xf32, #tpu.memory_space<vmem>>, %arg7: memref<16x512xf32, #tpu.memory_space<vmem>>) attributes {dimension_semantics = [#tpu.dimension_semantics<parallel>], iteration_bounds = array<i64: 1>, scalar_prefetch = 1 : i64, scratch_operands = 0 : i64, tpu.core_type = #tpu.core_type<tc>, window_params = [{transform_indices = @transform_0, window_bounds = array<i64: 217, 512>}, {pipeline_mode = #tpu.pipeline_mode<synchronous>, transform_indices = @transform_1, window_bounds = array<i64: 16, 217>}, {transform_indices = @transform_2, window_bounds = array<i64: 1, 512>}, {pipeline_mode = #tpu.pipeline_mode<synchronous>, transform_indices = @transform_3, window_bounds = array<i64: 16, 1>}, {pipeline_mode = #tpu.pipeline_mode<synchronous>, transform_indices = @transform_4, window_bounds = array<i64: 16, 1>}, {transform_indices = @transform_5, window_bounds = array<i64: 16, 512>}]} {
    %0 = arith.index_cast %arg0 : i32 to index
    %1 = memref.load %arg1[%0] : memref<1xi32, #tpu.memory_space<smem>>
    %c0_i32 = arith.constant 0 : i32
    %2 = arith.cmpi sgt, %1, %c0_i32 : i32
    %3 = arith.extui %2 : i1 to i32
    %c0_i32_0 = arith.constant 0 : i32
    %4 = arith.cmpi ne, %3, %c0_i32_0 : i32
    scf.if %4 {
      %c0 = arith.constant 0 : index
      %c0_3 = arith.constant 0 : index
      %10 = vector.load %arg3[%c0, %c0_3] : memref<16x217xbf16, #tpu.memory_space<vmem>>, vector<16x217xbf16>
      %c0_4 = arith.constant 0 : index
      %c0_5 = arith.constant 0 : index
      %11 = vector.load %arg2[%c0_4, %c0_5] : memref<217x512xbf16, #tpu.memory_space<vmem>>, vector<217x512xbf16>
      %cst = arith.constant dense<0.000000e+00> : vector<16x512xf32>
      %12 = tpu.matmul %10, %11, %cst {dimension_numbers = #tpu.dot_dimension_numbers<[1], [0], [0], [1], [0, 0, 1, 1], [], []>} : vector<16x217xbf16>, vector<217x512xbf16>, vector<16x512xf32> -> vector<16x512xf32>
      %cst_6 = arith.constant dense<0.000000e+00> : vector<512xf32>
      %13 = vector.multi_reduction <add>, %12, %cst_6 [0] : vector<16x512xf32> to vector<512xf32>
      %14 = vector.shape_cast %13 : vector<512xf32> to vector<1x512xf32>
      %cst_7 = arith.constant 1.600000e+01 : f32
      %15 = vector.broadcast %cst_7 : f32 to vector<1x512xf32>
      %16 = arith.divf %14, %15 : vector<1x512xf32>
      %17 = vector.broadcast %16 : vector<1x512xf32> to vector<16x512xf32>
      %18 = arith.subf %12, %17 : vector<16x512xf32>
      %19 = arith.mulf %18, %18 : vector<16x512xf32>
      %cst_8 = arith.constant dense<0.000000e+00> : vector<512xf32>
      %20 = vector.multi_reduction <add>, %19, %cst_8 [0] : vector<16x512xf32> to vector<512xf32>
      %21 = vector.shape_cast %20 : vector<512xf32> to vector<1x512xf32>
      %cst_9 = arith.constant 1.600000e+01 : f32
      %22 = vector.broadcast %cst_9 : f32 to vector<1x512xf32>
      %23 = arith.divf %21, %22 : vector<1x512xf32>
      %24 = vector.broadcast %16 : vector<1x512xf32> to vector<16x512xf32>
      %25 = arith.subf %12, %24 : vector<16x512xf32>
      %cst_10 = arith.constant 9.99999997E-7 : f32
      %26 = vector.broadcast %cst_10 : f32 to vector<1x512xf32>
      %27 = arith.addf %23, %26 : vector<1x512xf32>
      %28 = math.rsqrt %27 : vector<1x512xf32>
      %29 = vector.broadcast %28 : vector<1x512xf32> to vector<16x512xf32>
      %30 = arith.mulf %25, %29 : vector<16x512xf32>
      %c0_11 = arith.constant 0 : index
      %c0_12 = arith.constant 0 : index
      %31 = vector.load %arg5[%c0_11, %c0_12] : memref<16x1xf32, #tpu.memory_space<vmem>>, vector<16x1xf32>
      %32 = vector.broadcast %31 : vector<16x1xf32> to vector<16x512xf32>
      %33 = arith.mulf %30, %32 : vector<16x512xf32>
      %c0_13 = arith.constant 0 : index
      %c0_14 = arith.constant 0 : index
      %34 = vector.load %arg6[%c0_13, %c0_14] : memref<16x1xf32, #tpu.memory_space<vmem>>, vector<16x1xf32>
      %35 = vector.broadcast %34 : vector<16x1xf32> to vector<16x512xf32>
      %36 = arith.addf %33, %35 : vector<16x512xf32>
      %cst_15 = arith.constant 0.000000e+00 : f32
      %37 = vector.broadcast %cst_15 : f32 to vector<16x512xf32>
      %38 = arith.maximumf %36, %37 : vector<16x512xf32>
      %c0_16 = arith.constant 0 : index
      %c0_17 = arith.constant 0 : index
      %39 = vector.load %arg4[%c0_16, %c0_17] : memref<1x512xf32, #tpu.memory_space<vmem>>, vector<1x512xf32>
      %40 = vector.broadcast %39 : vector<1x512xf32> to vector<16x512xf32>
      %41 = arith.mulf %38, %40 : vector<16x512xf32>
      %c0_18 = arith.constant 0 : index
      %c0_19 = arith.constant 0 : index
      %42 = vector.load %arg7[%c0_18, %c0_19] : memref<16x512xf32, #tpu.memory_space<vmem>>, vector<16x512xf32>
      tpu.vector_store %arg7[%c0_18, %c0_19], %41 {strides = array<i32>} : memref<16x512xf32, #tpu.memory_space<vmem>>, vector<16x512xf32>,
    } else {
    }
    %5 = arith.index_cast %arg0 : i32 to index
    %6 = memref.load %arg1[%5] : memref<1xi32, #tpu.memory_space<smem>>
    %c0_i32_1 = arith.constant 0 : i32
    %7 = arith.cmpi eq, %6, %c0_i32_1 : i32
    %8 = arith.extui %7 : i1 to i32
    %c0_i32_2 = arith.constant 0 : i32
    %9 = arith.cmpi ne, %8, %c0_i32_2 : i32
    scf.if %9 {
      %cst = arith.constant 0.000000e+00 : f32
      %10 = vector.broadcast %cst : f32 to vector<16x512xf32>
      %c0 = arith.constant 0 : index
      %c0_3 = arith.constant 0 : index
      %11 = vector.load %arg7[%c0, %c0_3] : memref<16x512xf32, #tpu.memory_space<vmem>>, vector<16x512xf32>
      tpu.vector_store %arg7[%c0, %c0_3], %10 {strides = array<i32>} : memref<16x512xf32, #tpu.memory_space<vmem>>, vector<16x512xf32>,
    } else {
    }
    return
  }
  func.func @transform_0(%arg0: i32, %arg1: memref<1xi32, #tpu.memory_space<smem>>) -> (i32, i32) {
    %c0_i32 = arith.constant 0 : i32
    %c0_i32_0 = arith.constant 0 : i32
    return %c0_i32, %arg0 : i32, i32
  }
  func.func @transform_1(%arg0: i32, %arg1: memref<1xi32, #tpu.memory_space<smem>>) -> (i32, i32) {
    %c0_i32 = arith.constant 0 : i32
    %c0_i32_0 = arith.constant 0 : i32
    %c0_i32_1 = arith.constant 0 : i32
    return %c0_i32, %c0_i32_0 : i32, i32
  }
  func.func @transform_2(%arg0: i32, %arg1: memref<1xi32, #tpu.memory_space<smem>>) -> (i32, i32) {
    %c0_i32 = arith.constant 0 : i32
    %c0_i32_0 = arith.constant 0 : i32
    return %c0_i32, %arg0 : i32, i32
  }
  func.func @transform_3(%arg0: i32, %arg1: memref<1xi32, #tpu.memory_space<smem>>) -> (i32, i32) {
    %c0_i32 = arith.constant 0 : i32
    %c0_i32_0 = arith.constant 0 : i32
    %c0_i32_1 = arith.constant 0 : i32
    return %c0_i32, %c0_i32_0 : i32, i32
  }
  func.func @transform_4(%arg0: i32, %arg1: memref<1xi32, #tpu.memory_space<smem>>) -> (i32, i32) {
    %c0_i32 = arith.constant 0 : i32
    %c0_i32_0 = arith.constant 0 : i32
    %c0_i32_1 = arith.constant 0 : i32
    return %c0_i32, %c0_i32_0 : i32, i32
  }
  func.func @transform_5(%arg0: i32, %arg1: memref<1xi32, #tpu.memory_space<smem>>) -> (i32, i32) {
    %c0_i32 = arith.constant 0 : i32
    %c0_i32_0 = arith.constant 0 : i32
    return %c0_i32, %arg0 : i32, i32
  }
}

</mosaic_0001>

<bundles_post_ra>
// kernel: sparse_encoder_forward.4
= control target key start
LH: loop header
LB: loop body
LE: loop exit
PB: predicated region body
PF: predicated region fallthrough
CT: control target
= control target key end

     0   :  { %s932_s0 = inlined_call_operand.<no memory space> [shape: s32[1], index: 0, kind: input, shape index: {}]   ;;  %s933_s1 = inlined_call_operand.vmem [shape: bf16[8,4096], index: 1, kind: input, shape index: {}]   ;;  %s934_s2 = inlined_call_operand.vmem [shape: f32[1,4096], index: 2, kind: input, shape index: {}]   ;;  %s935_s3 = inlined_call_operand.vmem [shape: f32[8,1], index: 3, kind: input, shape index: {}]   ;;  %s936_s4 = inlined_call_operand.vmem [shape: f32[8,1], index: 4, kind: input, shape index: {}]   ;;  %s937_s5 = inlined_call_operand.vmem [shape: f32[8,4096], index: 5, kind: output, shape index: {}]  }
   0x1   :  { %10 = sst [smem:[#allocation3]] %s932_s0  ;;  %p357_p0 = scmp.le.s32.totalorder %s932_s0, 0 }
   0x3   :  { %23 = sbr.rel (%p357_p0) target bundleno = 176 (0xb0), region = 21 }
   0x8   :  { %v72_v0 = vld [vmem:[%s935_s3] sm:$0xff]  ;;  %v362_v1 = vmov 0   ;;  %v414_v4 = vld [vmem:[%s933_s1 + $0x8] sm:$0xff]  ;;  %v419_v5 = vld [vmem:[%s933_s1 + $0x10] sm:$0xff] }
   0x9   :  { %361 = vset.pattern.permute.xlu0 %v362_v1  ;;  %v110_v2 = vld [vmem:[%s936_s4] sm:$0xff]  ;;  %v424_v6 = vld [vmem:[%s933_s1 + $0x18] sm:$0xff]  ;;  %v42_v10 = vunpack.c.l.bf16 %v414_v4  ;;  %v43_v11 = vunpack.c.h.bf16 %v414_v4  ;;  %v440_v13 = vld [vmem:[%s934_s2 + $0x8] sm:$0xff]  ;;  %v44_v14 = vunpack.c.l.bf16 %v419_v5  ;;  %v45_v15 = vunpack.c.h.bf16 %v419_v5 }
   0xa   :  { %75 = vperm.xlu0 %361, %v72_v0   ;;  %v409_v3 = vld [vmem:[%s933_s1] sm:$0xff]  ;;  %v46_v16 = vunpack.c.l.bf16 %v424_v6  ;;  %v47_v17 = vunpack.c.h.bf16 %v424_v6  ;;  %v453_v22 = vld [vmem:[%s934_s2 + $0x10] sm:$0xff]  ;;  %v196_v27 = vperm.slane %v440_v13, 0  ;;  %v197_v28 = vperm.slane %v440_v13, 1  ;;  %v466_v31 = vld [vmem:[%s934_s2 + $0x18] sm:$0xff] }
   0xb   :  { %v429_v7 = vld [vmem:[%s934_s2] sm:$0xff]  ;;  %v40_v8 = vunpack.c.l.bf16 %v409_v3  ;;  %v41_v9 = vunpack.c.h.bf16 %v409_v3  ;;  %v198_v29 = vperm.slane %v440_v13, 2  ;;  %v199_v30 = vperm.slane %v440_v13, 3  ;;  %v484_v41 = vld [vmem:[%s933_s1 + $0x28] sm:$0xff]  ;;  %v489_v42 = vld [vmem:[%s933_s1 + $0x30] sm:$0xff] }
   0xc   :  { %v188_v18 = vperm.slane %v429_v7, 0  ;;  %v189_v19 = vperm.slane %v429_v7, 1  ;;  %v190_v20 = vperm.slane %v429_v7, 2  ;;  %v191_v21 = vperm.slane %v429_v7, 3  ;;  %v475_v36 = vld [vmem:[%s933_s1 + $0x20] sm:$0xff]  ;;  %v498_v47 = vld [vmem:[%s933_s1 + $0x38] sm:$0xff] }
   0xd   :  { %v192_v23 = vperm.slane %v429_v7, 4  ;;  %v193_v24 = vperm.slane %v429_v7, 5  ;;  %v194_v25 = vperm.slane %v429_v7, 6  ;;  %v195_v26 = vperm.slane %v429_v7, 7  ;;  %v503_v48 = vld [vmem:[%s933_s1 + $0x40] sm:$0xff]  ;;  %v510_v51 = vld [vmem:[%s933_s1 + $0x48] sm:$0xff] }
   0xe   :  { %v200_v32 = vperm.slane %v440_v13, 4  ;;  %v515_v52 = vld [vmem:[%s933_s1 + $0x50] sm:$0xff]  ;;  %v48_v53 = vunpack.c.l.bf16 %v475_v36  ;;  %v49_v54 = vunpack.c.h.bf16 %v475_v36  ;;  %v522_v55 = vld [vmem:[%s933_s1 + $0x58] sm:$0xff]  ;;  %v50_v56 = vunpack.c.l.bf16 %v484_v41  ;;  %v531_v60 = vld [vmem:[%s933_s1 + $0x60] sm:$0xff] }
   0xf   :  { %v51_v57 = vunpack.c.h.bf16 %v484_v41  ;;  %v52_v58 = vunpack.c.l.bf16 %v489_v42  ;;  %v53_v59 = vunpack.c.h.bf16 %v489_v42  ;;  %v54_v61 = vunpack.c.l.bf16 %v498_v47  ;;  %v546_v50 = vld [vmem:[%s933_s1 + $0x68] sm:$0xff]  ;;  %v561_v43 = vld [vmem:[%s933_s1 + $0x70] sm:$0xff] }
  0x10   :  { %v55_v62 = vunpack.c.h.bf16 %v498_v47  ;;  %v56_v63 = vunpack.c.l.bf16 %v503_v48  ;;  %v57_v0 = vunpack.c.h.bf16 %v503_v48  ;;  %v59_v36 = vunpack.c.h.bf16 %v510_v51 }
  0x11   :  { %v60_v41 = vunpack.c.l.bf16 %v515_v52  ;;  %v61_v42 = vunpack.c.h.bf16 %v515_v52  ;;  %v62_v49 = vunpack.c.l.bf16 %v522_v55 }
  0x12   :  { %113 = vperm.xlu0 %361, %v110_v2   ;;  %v58_v2 = vunpack.c.l.bf16 %v510_v51 }
  0x7c   :  { %v435_v12 = vpop.permute.xlu0 %75 }
  0x7d   :  { %v78_v46 = vmul.f32 %v435_v12, %v40_v8  ;;  %v79_v45 = vmul.f32 %v435_v12, %v41_v9  ;;  %v80_v44 = vmul.f32 %v435_v12, %v42_v10  ;;  %v81_v3 = vmul.f32 %v435_v12, %v43_v11  ;;  %v572_v8 = vld [vmem:[%s933_s1 + $0x78] sm:$0xff] }
  0x7e   :  { %v82_v9 = vmul.f32 %v435_v12, %v44_v14  ;;  %v83_v11 = vmul.f32 %v435_v12, %v45_v15  ;;  %v85_v5 = vmul.f32 %v435_v12, %v47_v17  ;;  %v86_v15 = vmul.f32 %v435_v12, %v48_v53 }
  0x7f   :  { %v87_v33 = vmul.f32 %v435_v12, %v49_v54  ;;  %v71_v6 = vunpack.c.h.bf16 %v572_v8  ;;  %v89_v17 = vmul.f32 %v435_v12, %v51_v57  ;;  %v97_v7 = vmul.f32 %v435_v12, %v59_v36 }
  0x84   :  { %v537_v1 = vpop.permute.xlu0 %113 }
  0x85   :  { %v116_v10 = vadd.f32 %v537_v1, %v78_v46  ;;  %v117_v37 = vadd.f32 %v537_v1, %v79_v45  ;;  %v118_v35 = vadd.f32 %v537_v1, %v80_v44  ;;  %v119_v34 = vadd.f32 %v537_v1, %v81_v3 }
  0x86   :  { %v84_v45 = vmul.f32 %v435_v12, %v46_v16  ;;  %v120_v44 = vadd.f32 %v537_v1, %v82_v9  ;;  %v121_v3 = vadd.f32 %v537_v1, %v83_v11  ;;  %v88_v16 = vmul.f32 %v435_v12, %v50_v56 }
  0x87   :  { %v148_v4 = vmax.f32 %v116_v10, 0.0  ;;  %v149_v14 = vmax.f32 %v117_v37, 0.0  ;;  %v150_v38 = vmax.f32 %v118_v35, 0.0  ;;  %v123_v9 = vadd.f32 %v537_v1, %v85_v5 }
  0x88   :  { %v122_v39 = vadd.f32 %v537_v1, %v84_v45  ;;  %v151_v46 = vmax.f32 %v119_v34, 0.0  ;;  %v124_v53 = vadd.f32 %v537_v1, %v86_v15  ;;  %v152_v40 = vmax.f32 %v120_v44, 0.0 }
  0x89   :  { %v90_v11 = vmul.f32 %v435_v12, %v52_v58  ;;  %v125_v10 = vadd.f32 %v537_v1, %v87_v33  ;;  %v126_v35 = vadd.f32 %v537_v1, %v88_v16  ;;  %v153_v37 = vmax.f32 %v121_v3, 0.0 }
  0x8a   :  { %v154_v54 = vmax.f32 %v122_v39, 0.0  ;;  %v252_v56 = vmul.f32 %v188_v18, %v148_v4  ;;  %v253_v34 = vmul.f32 %v189_v19, %v149_v14  ;;  %v254_v57 = vmul.f32 %v190_v20, %v150_v38 }
  0x8b   :  { %v91_v45 = vmul.f32 %v435_v12, %v53_v59  ;;  %v127_v44 = vadd.f32 %v537_v1, %v89_v17  ;;  %v155_v58 = vmax.f32 %v123_v9, 0.0  ;;  %v255_v33 = vmul.f32 %v191_v21, %v151_v46 }
  0x8c   :  { %v92_v5 = vmul.f32 %v435_v12, %v54_v61  ;;  %v128_v39 = vadd.f32 %v537_v1, %v90_v11  ;;  %v156_v15 = vmax.f32 %v124_v53, 0.0  ;;  %v256_v18 = vmul.f32 %v192_v23, %v152_v40  ;;  %284 = vst [vmem:[%s937_s5] sm:$0xff] %v252_v56 }
  0x8d   :  { %v93_v19 = vmul.f32 %v435_v12, %v55_v62  ;;  %v129_v20 = vadd.f32 %v537_v1, %v91_v45  ;;  %v157_v38 = vmax.f32 %v125_v10, 0.0  ;;  %v257_v21 = vmul.f32 %v193_v24, %v153_v37  ;;  %285 = vst [vmem:[%s937_s5 + $0x8] sm:$0xff] %v253_v34 }
  0x8e   :  { %v94_v23 = vmul.f32 %v435_v12, %v56_v63  ;;  %v130_v40 = vadd.f32 %v537_v1, %v92_v5  ;;  %v158_v59 = vmax.f32 %v126_v35, 0.0  ;;  %v258_v47 = vmul.f32 %v194_v25, %v154_v54  ;;  %286 = vst [vmem:[%s937_s5 + $0x10] sm:$0xff] %v254_v57 }
  0x8f   :  { %v95_v24 = vmul.f32 %v435_v12, %v57_v0  ;;  %v131_v61 = vadd.f32 %v537_v1, %v93_v19  ;;  %v159_v62 = vmax.f32 %v127_v44, 0.0  ;;  %v259_v63 = vmul.f32 %v195_v26, %v155_v58  ;;  %287 = vst [vmem:[%s937_s5 + $0x18] sm:$0xff] %v255_v33 }
  0x90   :  { %v96_v25 = vmul.f32 %v435_v12, %v58_v2  ;;  %v132_v4 = vadd.f32 %v537_v1, %v94_v23  ;;  %v160_v14 = vmax.f32 %v128_v39, 0.0  ;;  %v260_v48 = vmul.f32 %v196_v27, %v156_v15  ;;  %288 = vst [vmem:[%s937_s5 + $0x20] sm:$0xff] %v256_v18 }
  0x91   :  { %v133_v26 = vadd.f32 %v537_v1, %v95_v24  ;;  %v161_v0 = vmax.f32 %v129_v20, 0.0  ;;  %v261_v2 = vmul.f32 %v197_v28, %v157_v38  ;;  %289 = vst [vmem:[%s937_s5 + $0x28] sm:$0xff] %v257_v21  ;;  %v98_v27 = vmul.f32 %v435_v12, %v60_v41 }
  0x92   :  { %v134_v46 = vadd.f32 %v537_v1, %v96_v25  ;;  %v162_v3 = vmax.f32 %v130_v40, 0.0  ;;  %v262_v51 = vmul.f32 %v198_v29, %v158_v59  ;;  %290 = vst [vmem:[%s937_s5 + $0x30] sm:$0xff] %v258_v47  ;;  %v99_v28 = vmul.f32 %v435_v12, %v61_v42 }
  0x93   :  { %v135_v36 = vadd.f32 %v537_v1, %v97_v7  ;;  %v163_v16 = vmax.f32 %v131_v61, 0.0  ;;  %v263_v41 = vmul.f32 %v199_v30, %v159_v62  ;;  %291 = vst [vmem:[%s937_s5 + $0x38] sm:$0xff] %v259_v63  ;;  %v100_v29 = vmul.f32 %v435_v12, %v62_v49 }
  0x94   :  { %v136_v9 = vadd.f32 %v537_v1, %v98_v27  ;;  %v164_v17 = vmax.f32 %v132_v4, 0.0  ;;  %v264_v52 = vmul.f32 %v200_v32, %v160_v14  ;;  %292 = vst [vmem:[%s937_s5 + $0x40] sm:$0xff] %v260_v48  ;;  %v938_v30 = vunpack.c.h.bf16 %v522_v55 }
  0x95   :  { %v137_v53 = vadd.f32 %v537_v1, %v99_v28  ;;  %v165_v11 = vmax.f32 %v133_v26, 0.0  ;;  %v939_v10 = vperm.slane %v440_v13, 5  ;;  %293 = vst [vmem:[%s937_s5 + $0x48] sm:$0xff] %v261_v2  ;;  %v940_v32 = vunpack.c.l.bf16 %v531_v60 }
  0x96   :  { %v101_v42 = vmul.f32 %v435_v12, %v938_v30  ;;  %v138_v37 = vadd.f32 %v537_v1, %v100_v29  ;;  %v166_v54 = vmax.f32 %v134_v46, 0.0  ;;  %v941_v55 = vperm.slane %v440_v13, 6  ;;  %294 = vst [vmem:[%s937_s5 + $0x50] sm:$0xff] %v262_v51 }
  0x97   :  { %v265_v49 = vmul.f32 %v939_v10, %v161_v0  ;;  %v102_v35 = vmul.f32 %v435_v12, %v940_v32  ;;  %v942_v34 = vunpack.c.h.bf16 %v531_v60  ;;  %v167_v44 = vmax.f32 %v135_v36, 0.0  ;;  %295 = vst [vmem:[%s937_s5 + $0x58] sm:$0xff] %v263_v41 }
  0x98   :  { %v266_v56 = vmul.f32 %v941_v55, %v162_v3  ;;  %v139_v45 = vadd.f32 %v537_v1, %v101_v42  ;;  %v943_v58 = vperm.slane %v440_v13, 7  ;;  %v944_v5 = vunpack.c.l.bf16 %v546_v50  ;;  %296 = vst [vmem:[%s937_s5 + $0x60] sm:$0xff] %v264_v52 }
  0x99   :  { %v103_v57 = vmul.f32 %v435_v12, %v942_v34  ;;  %v140_v15 = vadd.f32 %v537_v1, %v102_v35  ;;  %v168_v18 = vmax.f32 %v136_v9, 0.0  ;;  %v945_v60 = vperm.slane %v453_v22, 0  ;;  %297 = vst [vmem:[%s937_s5 + $0x68] sm:$0xff] %v265_v49 }
  0x9a   :  { %v267_v33 = vmul.f32 %v943_v58, %v163_v16  ;;  %v104_v39 = vmul.f32 %v435_v12, %v944_v5  ;;  %v946_v13 = vunpack.c.h.bf16 %v546_v50  ;;  %v169_v21 = vmax.f32 %v137_v53, 0.0  ;;  %298 = vst [vmem:[%s937_s5 + $0x70] sm:$0xff] %v266_v56 }
  0x9b   :  { %v268_v19 = vmul.f32 %v945_v60, %v164_v17  ;;  %v141_v38 = vadd.f32 %v537_v1, %v103_v57  ;;  %v947_v23 = vperm.slane %v453_v22, 1  ;;  %v948_v59 = vunpack.c.l.bf16 %v561_v43 }
  0x9c   :  { %v105_v20 = vmul.f32 %v435_v12, %v946_v13  ;;  %v142_v24 = vadd.f32 %v537_v1, %v104_v39  ;;  %v170_v61 = vmax.f32 %v138_v37, 0.0  ;;  %v949_v50 = vperm.slane %v453_v22, 2  ;;  %299 = vst [vmem:[%s937_s5 + $0x78] sm:$0xff] %v267_v33 }
  0x9d   :  { %v269_v40 = vmul.f32 %v947_v23, %v165_v11  ;;  %v106_v47 = vmul.f32 %v435_v12, %v948_v59  ;;  %v950_v63 = vunpack.c.h.bf16 %v561_v43  ;;  %v171_v14 = vmax.f32 %v139_v45, 0.0  ;;  %300 = vst [vmem:[%s937_s5 + $0x80] sm:$0xff] %v268_v19 }
  0x9e   :  { %v270_v62 = vmul.f32 %v949_v50, %v166_v54  ;;  %v143_v4 = vadd.f32 %v537_v1, %v105_v20  ;;  %v951_v48 = vperm.slane %v453_v22, 3  ;;  %v952_v26 = vunpack.c.l.bf16 %v572_v8 }
  0x9f   :  { %v107_v25 = vmul.f32 %v435_v12, %v950_v63  ;;  %v144_v2 = vadd.f32 %v537_v1, %v106_v47  ;;  %v172_v27 = vmax.f32 %v140_v15, 0.0  ;;  %v953_v43 = vperm.slane %v453_v22, 4  ;;  %301 = vst [vmem:[%s937_s5 + $0x88] sm:$0xff] %v269_v40 }
  0xa0   :  { %v271_v7 = vmul.f32 %v951_v48, %v167_v44  ;;  %v108_v0 = vmul.f32 %v435_v12, %v952_v26  ;;  %v109_v3 = vmul.f32 %v435_v12, %v71_v6  ;;  %v173_v28 = vmax.f32 %v141_v38, 0.0  ;;  %302 = vst [vmem:[%s937_s5 + $0x90] sm:$0xff] %v270_v62 }
  0xa1   :  { %v272_v46 = vmul.f32 %v953_v43, %v168_v18  ;;  %v145_v51 = vadd.f32 %v537_v1, %v107_v25  ;;  %v954_v36 = vperm.slane %v453_v22, 5  ;;  %v214_v41 = vperm.slane %v466_v31, 2 }
  0xa2   :  { %v146_v29 = vadd.f32 %v537_v1, %v108_v0  ;;  %v174_v9 = vmax.f32 %v142_v24, 0.0  ;;  %v955_v17 = vperm.slane %v453_v22, 6  ;;  %v215_v12 = vperm.slane %v466_v31, 3  ;;  %303 = vst [vmem:[%s937_s5 + $0x98] sm:$0xff] %v271_v7 }
  0xa3   :  { %v273_v16 = vmul.f32 %v954_v36, %v169_v21  ;;  %v147_v6 = vadd.f32 %v537_v1, %v109_v3  ;;  %v175_v52 = vmax.f32 %v143_v4, 0.0  ;;  %v956_v30 = vperm.slane %v453_v22, 7  ;;  %304 = vst [vmem:[%s937_s5 + $0xa0] sm:$0xff] %v272_v46 }
  0xa4   :  { %v274_v8 = vmul.f32 %v955_v17, %v170_v61  ;;  %v216_v53 = vperm.slane %v466_v31, 4  ;;  %v176_v11 = vmax.f32 %v144_v2, 0.0  ;;  %v957_v10 = vperm.slane %v466_v31, 0 }
  0xa5   :  { %v275_v42 = vmul.f32 %v956_v30, %v171_v14  ;;  %v217_v1 = vperm.slane %v466_v31, 5  ;;  %v177_v32 = vmax.f32 %v145_v51, 0.0  ;;  %v958_v22 = vperm.slane %v466_v31, 1  ;;  %305 = vst [vmem:[%s937_s5 + $0xa8] sm:$0xff] %v273_v16 }
  0xa6   :  { %v276_v49 = vmul.f32 %v957_v10, %v172_v27  ;;  %v218_v37 = vperm.slane %v466_v31, 6  ;;  %v178_v54 = vmax.f32 %v146_v29, 0.0  ;;  %v278_v55 = vmul.f32 %v214_v41, %v174_v9  ;;  %306 = vst [vmem:[%s937_s5 + $0xb0] sm:$0xff] %v274_v8 }
  0xa7   :  { %v277_v35 = vmul.f32 %v958_v22, %v173_v28  ;;  %v219_v56 = vperm.slane %v466_v31, 7  ;;  %v179_v34 = vmax.f32 %v147_v6, 0.0  ;;  %v279_v57 = vmul.f32 %v215_v12, %v175_v52  ;;  %307 = vst [vmem:[%s937_s5 + $0xb8] sm:$0xff] %v275_v42 }
  0xa8   :  { %v280_v45 = vmul.f32 %v216_v53, %v176_v11  ;;  %308 = vst [vmem:[%s937_s5 + $0xc0] sm:$0xff] %v276_v49  ;;  %v281_v44 = vmul.f32 %v217_v1, %v177_v32  ;;  %v282_v58 = vmul.f32 %v218_v37, %v178_v54 }
  0xa9   :  { %309 = vst [vmem:[%s937_s5 + $0xc8] sm:$0xff] %v277_v35  ;;  %v283_v31 = vmul.f32 %v219_v56, %v179_v34 }
  0xaa   :  { %310 = vst [vmem:[%s937_s5 + $0xd0] sm:$0xff] %v278_v55 }
  0xab   :  { %311 = vst [vmem:[%s937_s5 + $0xd8] sm:$0xff] %v279_v57 }
  0xac   :  { %312 = vst [vmem:[%s937_s5 + $0xe0] sm:$0xff] %v280_v45 }
  0xad   :  { %313 = vst [vmem:[%s937_s5 + $0xe8] sm:$0xff] %v281_v44 }
  0xae   :  { %314 = vst [vmem:[%s937_s5 + $0xf0] sm:$0xff] %v282_v58 }
  0xaf   :  { %315 = vst [vmem:[%s937_s5 + $0xf8] sm:$0xff] %v283_v31 }
  0xb0 PF:  { %s316_s12 = sld [smem:[#allocation3]] }
  0xb6   :  { %p358_p1 = scmp.ne.s32.totalorder %s316_s12, 0 }
  0xb8   :  { %320 = sbr.rel (%p358_p1) target bundleno = 222 (0xde), region = 25 }
  0xbd   :  { %v363_v33 = vmov 0.0  }
  0xbe   :  { %321 = vst [vmem:[%s937_s5] sm:$0xff] %v363_v33 }
  0xbf   :  { %322 = vst [vmem:[%s937_s5 + $0x8] sm:$0xff] %v363_v33 }
  0xc0   :  { %323 = vst [vmem:[%s937_s5 + $0x10] sm:$0xff] %v363_v33 }
  0xc1   :  { %324 = vst [vmem:[%s937_s5 + $0x18] sm:$0xff] %v363_v33 }
  0xc2   :  { %325 = vst [vmem:[%s937_s5 + $0x20] sm:$0xff] %v363_v33 }
  0xc3   :  { %326 = vst [vmem:[%s937_s5 + $0x28] sm:$0xff] %v363_v33 }
  0xc4   :  { %327 = vst [vmem:[%s937_s5 + $0x30] sm:$0xff] %v363_v33 }
  0xc5   :  { %328 = vst [vmem:[%s937_s5 + $0x38] sm:$0xff] %v363_v33 }
  0xc6   :  { %329 = vst [vmem:[%s937_s5 + $0x40] sm:$0xff] %v363_v33 }
  0xc7   :  { %330 = vst [vmem:[%s937_s5 + $0x48] sm:$0xff] %v363_v33 }
  0xc8   :  { %331 = vst [vmem:[%s937_s5 + $0x50] sm:$0xff] %v363_v33 }
  0xc9   :  { %332 = vst [vmem:[%s937_s5 + $0x58] sm:$0xff] %v363_v33 }
  0xca   :  { %333 = vst [vmem:[%s937_s5 + $0x60] sm:$0xff] %v363_v33 }
  0xcb   :  { %334 = vst [vmem:[%s937_s5 + $0x68] sm:$0xff] %v363_v33 }
  0xcc   :  { %335 = vst [vmem:[%s937_s5 + $0x70] sm:$0xff] %v363_v33 }
  0xcd   :  { %336 = vst [vmem:[%s937_s5 + $0x78] sm:$0xff] %v363_v33 }
  0xce   :  { %337 = vst [vmem:[%s937_s5 + $0x80] sm:$0xff] %v363_v33 }
  0xcf   :  { %338 = vst [vmem:[%s937_s5 + $0x88] sm:$0xff] %v363_v33 }
  0xd0   :  { %339 = vst [vmem:[%s937_s5 + $0x90] sm:$0xff] %v363_v33 }
  0xd1   :  { %340 = vst [vmem:[%s937_s5 + $0x98] sm:$0xff] %v363_v33 }
  0xd2   :  { %341 = vst [vmem:[%s937_s5 + $0xa0] sm:$0xff] %v363_v33 }
  0xd3   :  { %342 = vst [vmem:[%s937_s5 + $0xa8] sm:$0xff] %v363_v33 }
  0xd4   :  { %343 = vst [vmem:[%s937_s5 + $0xb0] sm:$0xff] %v363_v33 }
  0xd5   :  { %344 = vst [vmem:[%s937_s5 + $0xb8] sm:$0xff] %v363_v33 }
  0xd6   :  { %345 = vst [vmem:[%s937_s5 + $0xc0] sm:$0xff] %v363_v33 }
  0xd7   :  { %346 = vst [vmem:[%s937_s5 + $0xc8] sm:$0xff] %v363_v33 }
  0xd8   :  { %347 = vst [vmem:[%s937_s5 + $0xd0] sm:$0xff] %v363_v33 }
  0xd9   :  { %348 = vst [vmem:[%s937_s5 + $0xd8] sm:$0xff] %v363_v33 }
  0xda   :  { %349 = vst [vmem:[%s937_s5 + $0xe0] sm:$0xff] %v363_v33 }
  0xdb   :  { %350 = vst [vmem:[%s937_s5 + $0xe8] sm:$0xff] %v363_v33 }
  0xdc   :  { %351 = vst [vmem:[%s937_s5 + $0xf0] sm:$0xff] %v363_v33 }
  0xdd   :  { %352 = vst [vmem:[%s937_s5 + $0xf8] sm:$0xff] %v363_v33 }
  0xde PF:  {}

// kernel: sparse_encoder_forward.3
= control target key start
LH: loop header
LB: loop body
LE: loop exit
PB: predicated region body
PF: predicated region fallthrough
CT: control target
= control target key end

     0   :  { %vm24_vm0 = vcmask 7168   ;;  %v1532_v0 = vmov 0.0   ;;  %s2210_s0 = inlined_call_operand.<no memory space> [shape: s32[1], index: 0, kind: input, shape index: {}]   ;;  %s2211_s1 = inlined_call_operand.vmem [shape: bf16[28,4096], index: 1, kind: input, shape index: {}]   ;;  %s2212_s2 = inlined_call_operand.vmem [shape: bf16[8,28], index: 2, kind: input, shape index: {}]   ;;  %s2213_s3 = inlined_call_operand.vmem [shape: f32[1,4096], index: 3, kind: input, shape index: {}]   ;;  %s2214_s4 = inlined_call_operand.vmem [shape: bf16[8,4096], index: 4, kind: output, shape index: {0}]   ;;  %s2215_s5 = inlined_call_operand.vmem [shape: f32[8,1], index: 5, kind: output, shape index: {1}]   ;;  %s2216_s6 = inlined_call_operand.vmem [shape: f32[8,1], index: 6, kind: output, shape index: {2}]  }
   0x1   :  { %12 = sst [smem:[#allocation3]] %s2210_s0  ;;  %25 = vst.msk [vmem:[%s2215_s5] sm:$0xff] %vm24_vm0, %v1532_v0  ;;  %p1176_p0 = scmp.le.s32.totalorder %s2210_s0, 0 }
   0x2   :  { %26 = vst.msk [vmem:[%s2216_s6] sm:$0xff] %vm24_vm0, %v1532_v0 }
   0x3   :  { %31 = sbr.rel (%p1176_p0) target bundleno = 398 (0x18e), region = 21 }
   0x8   :  { %v1307_v1 = vld [vmem:[%s2211_s1 + $0x100] sm:$0xf]  ;;  %vm389_vm1 = vcmask 1045504   ;;  %v1498_v4 = vld [vmem:[%s2211_s1 + $0x104] sm:$0xf]  ;;  %vm385_vm2 = vcmask 228352  }
   0x9   :  { %v1514_v2 = vld [vmem:[%s2211_s1 + $0x17c] sm:$0x30]  ;;  %v1309_v5 = vld [vmem:[%s2211_s1 + $0x180] sm:$0x30]  ;;  %v1315_v6 = vld [vmem:[%s2211_s1 + $0x108] sm:$0xf] }
   0xa   :  { %v1308_v3 = vor.u32 %v1514_v2, %v1307_v1  ;;  %v1312_v7 = vor.u32 %v1498_v4, %v1309_v5  ;;  %v1515_v8 = vld [vmem:[%s2211_s1 + $0x184] sm:$0x30]  ;;  %v1499_v9 = vld [vmem:[%s2211_s1 + $0x10c] sm:$0xf]  ;;  %v1179_v14 = vld [vmem:[%s2211_s1] sm:$0xf] }
   0xb   :  { %v1317_v10 = vld [vmem:[%s2211_s1 + $0x188] sm:$0x30]  ;;  %v1316_v12 = vor.u32 %v1515_v8, %v1315_v6  ;;  %v1482_v15 = vld [vmem:[%s2211_s1 + $0x7c] sm:$0xf0]  ;;  %v1466_v18 = vld [vmem:[%s2211_s1 + $0x4] sm:$0xf] }
   0xc   :  { %v391_v11 = vsel %vm389_vm1, %v1308_v3, 0  ;;  %v1320_v13 = vor.u32 %v1499_v9, %v1317_v10  ;;  %v394_v16 = vsel %vm389_vm1, %v1312_v7, 0  ;;  %v1180_v17 = vor.u32 %v1482_v15, %v1179_v14  ;;  %v1181_v19 = vld [vmem:[%s2211_s1 + $0x80] sm:$0xf0]  ;;  %v1187_v23 = vld [vmem:[%s2211_s1 + $0x8] sm:$0xf] }
   0xd   :  { %492 = vmatpush.bf16.msra.mxu0 %v391_v11  ;;  %505 = vmatpush.bf16.msra.mxu1 %v394_v16  ;;  %v397_v20 = vsel %vm389_vm1, %v1316_v12, 0  ;;  %v1184_v22 = vor.u32 %v1466_v18, %v1181_v19  ;;  %v1483_v24 = vld [vmem:[%s2211_s1 + $0x84] sm:$0xf0]  ;;  %v1467_v26 = vld [vmem:[%s2211_s1 + $0xc] sm:$0xf] }
   0xe   :  { %v400_v21 = vsel %vm389_vm1, %v1320_v13, 0  ;;  %518 = vmatpush.bf16.msra.mxu2 %v397_v20  ;;  %v1188_v25 = vor.u32 %v1483_v24, %v1187_v23  ;;  %v1189_v27 = vld [vmem:[%s2211_s1 + $0x88] sm:$0xf0]  ;;  %v1638_v28 = vld [vmem:[%s2212_s2] sm:$0xf] }
   0xf   :  { %531 = vmatpush.bf16.msra.mxu3 %v400_v21  ;;  %v1192_v29 = vor.u32 %v1467_v26, %v1189_v27  ;;  %v1331_v30 = vld [vmem:[%s2211_s1 + $0x118] sm:$0xf]  ;;  %v1323_v32 = vld [vmem:[%s2211_s1 + $0x110] sm:$0xf]  ;;  %v1501_v35 = vld [vmem:[%s2211_s1 + $0x11c] sm:$0xf] }
  0x10   :  { %v1517_v31 = vld [vmem:[%s2211_s1 + $0x194] sm:$0x30]  ;;  %v1516_v34 = vld [vmem:[%s2211_s1 + $0x18c] sm:$0x30]  ;;  %v1333_v36 = vld [vmem:[%s2211_s1 + $0x198] sm:$0x30] }
  0x11   :  { %493 = vmatpush.bf16.msra.mxu0 %v1180_v17  ;;  %v1332_v33 = vor.u32 %v1517_v31, %v1331_v30  ;;  %506 = vmatpush.bf16.msra.mxu1 %v1184_v22  ;;  %v1324_v37 = vor.u32 %v1516_v34, %v1323_v32  ;;  %v1336_v38 = vor.u32 %v1501_v35, %v1333_v36  ;;  %v1500_v39 = vld [vmem:[%s2211_s1 + $0x114] sm:$0xf]  ;;  %v1203_v41 = vld [vmem:[%s2211_s1 + $0x18] sm:$0xf]  ;;  %v1195_v45 = vld [vmem:[%s2211_s1 + $0x10] sm:$0xf] }
  0x12   :  { %v1325_v40 = vld [vmem:[%s2211_s1 + $0x190] sm:$0x30]  ;;  %519 = vmatpush.bf16.msra.mxu2 %v1188_v25  ;;  %v1485_v44 = vld [vmem:[%s2211_s1 + $0x94] sm:$0xf0]  ;;  %v1484_v49 = vld [vmem:[%s2211_s1 + $0x8c] sm:$0xf0] }
  0x13   :  { %532 = vmatpush.bf16.msra.mxu3 %v1192_v29  ;;  %v409_v42 = vsel %vm389_vm1, %v1332_v33, 0  ;;  %v1328_v43 = vor.u32 %v1500_v39, %v1325_v40  ;;  %v403_v46 = vsel %vm389_vm1, %v1324_v37, 0  ;;  %v412_v47 = vsel %vm389_vm1, %v1336_v38, 0  ;;  %v1469_v50 = vld [vmem:[%s2211_s1 + $0x1c] sm:$0xf] }
  0x14   :  { %1433 = vmatmul.msk.bf16.vlgmr.msra.gmra.mxu0 %vm385_vm2, %v1638_v28  ;;  %v1204_v48 = vor.u32 %v1485_v44, %v1203_v41  ;;  %1434 = vmatmul.msk.bf16.vlgmr.msra.gmra.mxu1 %vm385_vm2, %v1638_v28  ;;  %v1196_v52 = vor.u32 %v1484_v49, %v1195_v45  ;;  %v1205_v53 = vld [vmem:[%s2211_s1 + $0x98] sm:$0xf0]  ;;  %v1468_v54 = vld [vmem:[%s2211_s1 + $0x14] sm:$0xf]  ;;  %v1347_v56 = vld [vmem:[%s2211_s1 + $0x128] sm:$0xf] }
  0x15   :  { %544 = vmatpush.bf16.msrb.mxu0 %v403_v46  ;;  %v406_v51 = vsel %vm389_vm1, %v1328_v43, 0  ;;  %1435 = vmatmul.msk.bf16.vlgmr.msra.gmra.mxu2 %vm385_vm2, %v1638_v28  ;;  %v1197_v55 = vld [vmem:[%s2211_s1 + $0x90] sm:$0xf0]  ;;  %v1519_v57 = vld [vmem:[%s2211_s1 + $0x1a4] sm:$0x30]  ;;  %v1208_v58 = vor.u32 %v1469_v50, %v1205_v53 }
  0x16   :  { %570 = vmatpush.bf16.msrb.mxu2 %v409_v42  ;;  %1436 = vmatmul.msk.bf16.vlgmr.msra.gmra.mxu3 %vm385_vm2, %v1638_v28  ;;  %v1200_v59 = vor.u32 %v1468_v54, %v1197_v55  ;;  %v1348_v60 = vor.u32 %v1519_v57, %v1347_v56  ;;  %v1339_v61 = vld [vmem:[%s2211_s1 + $0x120] sm:$0xf]  ;;  %v1503_v63 = vld [vmem:[%s2211_s1 + $0x12c] sm:$0xf]  ;;  %v1502_v2 = vld [vmem:[%s2211_s1 + $0x124] sm:$0xf] }
  0x17   :  { %583 = vmatpush.bf16.msrb.mxu3 %v412_v47  ;;  %557 = vmatpush.bf16.msrb.mxu1 %v406_v51  ;;  %v1518_v62 = vld [vmem:[%s2211_s1 + $0x19c] sm:$0x30]  ;;  %v1349_v1 = vld [vmem:[%s2211_s1 + $0x1a8] sm:$0x30]  ;;  %v1341_v3 = vld [vmem:[%s2211_s1 + $0x1a0] sm:$0x30] }
  0x18   :  { %v1340_v0 = vor.u32 %v1518_v62, %v1339_v61  ;;  %v421_v4 = vsel %vm389_vm1, %v1348_v60, 0  ;;  %v1352_v5 = vor.u32 %v1503_v63, %v1349_v1  ;;  %v1344_v6 = vor.u32 %v1502_v2, %v1341_v3  ;;  %v1219_v7 = vld [vmem:[%s2211_s1 + $0x28] sm:$0xf]  ;;  %v1211_v11 = vld [vmem:[%s2211_s1 + $0x20] sm:$0xf] }
  0x19   :  { %545 = vmatpush.bf16.msrb.mxu0 %v1196_v52  ;;  %v1487_v8 = vld [vmem:[%s2211_s1 + $0xa4] sm:$0xf0]  ;;  %v1486_v12 = vld [vmem:[%s2211_s1 + $0x9c] sm:$0xf0]  ;;  %v1471_v15 = vld [vmem:[%s2211_s1 + $0x2c] sm:$0xf] }
  0x1a   :  { %571 = vmatpush.bf16.msrb.mxu2 %v1204_v48  ;;  %v415_v9 = vsel %vm389_vm1, %v1340_v0, 0  ;;  %v1220_v10 = vor.u32 %v1487_v8, %v1219_v7  ;;  %v424_v13 = vsel %vm389_vm1, %v1352_v5, 0  ;;  %v418_v14 = vsel %vm389_vm1, %v1344_v6, 0  ;;  %v1221_v16 = vld [vmem:[%s2211_s1 + $0xa8] sm:$0xf0] }
  0x1b   :  { %584 = vmatpush.bf16.msrb.mxu3 %v1208_v58  ;;  %558 = vmatpush.bf16.msrb.mxu1 %v1200_v59  ;;  %v1212_v17 = vor.u32 %v1486_v12, %v1211_v11  ;;  %v1224_v18 = vor.u32 %v1471_v15, %v1221_v16  ;;  %v1470_v19 = vld [vmem:[%s2211_s1 + $0x24] sm:$0xf]  ;;  %v1363_v21 = vld [vmem:[%s2211_s1 + $0x138] sm:$0xf]  ;;  %v1355_v24 = vld [vmem:[%s2211_s1 + $0x130] sm:$0xf] }
  0x1c   :  { %v1213_v20 = vld [vmem:[%s2211_s1 + $0xa0] sm:$0xf0]  ;;  %v1521_v23 = vld [vmem:[%s2211_s1 + $0x1b4] sm:$0x30]  ;;  %v1520_v25 = vld [vmem:[%s2211_s1 + $0x1ac] sm:$0x30] }
  0x1d   :  { %596 = vmatpush.bf16.msra.mxu0 %v415_v9  ;;  %v1216_v22 = vor.u32 %v1470_v19, %v1213_v20  ;;  %v1356_v26 = vor.u32 %v1520_v25, %v1355_v24  ;;  %v1505_v27 = vld [vmem:[%s2211_s1 + $0x13c] sm:$0xf]  ;;  %v1504_v30 = vld [vmem:[%s2211_s1 + $0x134] sm:$0xf]  ;;  %v1364_v32 = vor.u32 %v1521_v23, %v1363_v21  ;;  %v1227_v36 = vld [vmem:[%s2211_s1 + $0x30] sm:$0xf] }
  0x1e   :  { %622 = vmatpush.bf16.msra.mxu2 %v421_v4  ;;  %v1365_v29 = vld [vmem:[%s2211_s1 + $0x1b8] sm:$0x30]  ;;  %v1357_v31 = vld [vmem:[%s2211_s1 + $0x1b0] sm:$0x30]  ;;  %v1488_v37 = vld [vmem:[%s2211_s1 + $0xac] sm:$0xf0] }
  0x1f   :  { %635 = vmatpush.bf16.msra.mxu3 %v424_v13  ;;  %609 = vmatpush.bf16.msra.mxu1 %v418_v14  ;;  %v1368_v33 = vor.u32 %v1505_v27, %v1365_v29  ;;  %v1360_v34 = vor.u32 %v1504_v30, %v1357_v31  ;;  %v427_v35 = vsel %vm389_vm1, %v1356_v26, 0  ;;  %v1235_v38 = vld [vmem:[%s2211_s1 + $0x38] sm:$0xf]  ;;  %v433_v40 = vsel %vm389_vm1, %v1364_v32, 0  ;;  %v1473_v42 = vld [vmem:[%s2211_s1 + $0x3c] sm:$0xf] }
  0x20   :  { %v1489_v39 = vld [vmem:[%s2211_s1 + $0xb4] sm:$0xf0]  ;;  %v1237_v43 = vld [vmem:[%s2211_s1 + $0xb8] sm:$0xf0]  ;;  %v1228_v45 = vor.u32 %v1488_v37, %v1227_v36  ;;  %v1472_v46 = vld [vmem:[%s2211_s1 + $0x34] sm:$0xf] }
  0x21   :  { %597 = vmatpush.bf16.msra.mxu0 %v1212_v17  ;;  %v436_v41 = vsel %vm389_vm1, %v1368_v33, 0  ;;  %v430_v44 = vsel %vm389_vm1, %v1360_v34, 0  ;;  %v1229_v47 = vld [vmem:[%s2211_s1 + $0xb0] sm:$0xf0]  ;;  %v1236_v48 = vor.u32 %v1489_v39, %v1235_v38  ;;  %v1240_v49 = vor.u32 %v1473_v42, %v1237_v43  ;;  %v1371_v51 = vld [vmem:[%s2211_s1 + $0x140] sm:$0xf] }
  0x22   :  { %623 = vmatpush.bf16.msra.mxu2 %v1220_v10  ;;  %v1232_v50 = vor.u32 %v1472_v46, %v1229_v47  ;;  %v1522_v52 = vld [vmem:[%s2211_s1 + $0x1bc] sm:$0x30]  ;;  %v1379_v53 = vld [vmem:[%s2211_s1 + $0x148] sm:$0xf]  ;;  %v1507_v55 = vld [vmem:[%s2211_s1 + $0x14c] sm:$0xf] }
  0x23   :  { %636 = vmatpush.bf16.msra.mxu3 %v1224_v18  ;;  %610 = vmatpush.bf16.msra.mxu1 %v1216_v22  ;;  %v1523_v54 = vld [vmem:[%s2211_s1 + $0x1c4] sm:$0x30]  ;;  %v1381_v56 = vld [vmem:[%s2211_s1 + $0x1c8] sm:$0x30]  ;;  %v1372_v57 = vor.u32 %v1522_v52, %v1371_v51  ;;  %v1506_v58 = vld [vmem:[%s2211_s1 + $0x144] sm:$0xf] }
  0x24   :  { %1437 = vmatmul.msk.bf16.vlgmr.msrb.gmra.mxu0 %vm385_vm2, %v1638_v28  ;;  %1438 = vmatmul.msk.bf16.vlgmr.msrb.gmra.mxu1 %vm385_vm2, %v1638_v28  ;;  %v1373_v59 = vld [vmem:[%s2211_s1 + $0x1c0] sm:$0x30]  ;;  %v1380_v60 = vor.u32 %v1523_v54, %v1379_v53  ;;  %v1384_v61 = vor.u32 %v1507_v55, %v1381_v56  ;;  %v1243_v0 = vld [vmem:[%s2211_s1 + $0x40] sm:$0xf]  ;;  %v1251_v2 = vld [vmem:[%s2211_s1 + $0x48] sm:$0xf] }
  0x25   :  { %648 = vmatpush.bf16.msrb.mxu0 %v427_v35  ;;  %1439 = vmatmul.msk.bf16.vlgmr.msrb.gmra.mxu2 %vm385_vm2, %v1638_v28  ;;  %v1376_v62 = vor.u32 %v1506_v58, %v1373_v59  ;;  %v439_v63 = vsel %vm389_vm1, %v1372_v57, 0  ;;  %v1490_v1 = vld [vmem:[%s2211_s1 + $0xbc] sm:$0xf0]  ;;  %v1491_v3 = vld [vmem:[%s2211_s1 + $0xc4] sm:$0xf0] }
  0x26   :  { %1440 = vmatmul.msk.bf16.vlgmr.msrb.gmra.mxu3 %vm385_vm2, %v1638_v28  ;;  %674 = vmatpush.bf16.msrb.mxu2 %v433_v40  ;;  %v445_v4 = vsel %vm389_vm1, %v1380_v60, 0  ;;  %v448_v5 = vsel %vm389_vm1, %v1384_v61, 0  ;;  %v1475_v6 = vld [vmem:[%s2211_s1 + $0x4c] sm:$0xf]  ;;  %v1244_v9 = vor.u32 %v1490_v1, %v1243_v0  ;;  %v1474_v10 = vld [vmem:[%s2211_s1 + $0x44] sm:$0xf]  ;;  %v1252_v12 = vor.u32 %v1491_v3, %v1251_v2 }
  0x27   :  { %687 = vmatpush.bf16.msrb.mxu3 %v436_v41  ;;  %661 = vmatpush.bf16.msrb.mxu1 %v430_v44  ;;  %v1253_v7 = vld [vmem:[%s2211_s1 + $0xc8] sm:$0xf0]  ;;  %v442_v8 = vsel %vm389_vm1, %v1376_v62, 0  ;;  %v1245_v11 = vld [vmem:[%s2211_s1 + $0xc0] sm:$0xf0] }
  0x28   :  { %v1256_v13 = vor.u32 %v1475_v6, %v1253_v7  ;;  %v1248_v14 = vor.u32 %v1474_v10, %v1245_v11  ;;  %v1387_v15 = vld [vmem:[%s2211_s1 + $0x150] sm:$0xf]  ;;  %v1395_v17 = vld [vmem:[%s2211_s1 + $0x158] sm:$0xf]  ;;  %v1509_v19 = vld [vmem:[%s2211_s1 + $0x15c] sm:$0xf] }
  0x29   :  { %649 = vmatpush.bf16.msrb.mxu0 %v1228_v45  ;;  %v1524_v16 = vld [vmem:[%s2211_s1 + $0x1cc] sm:$0x30]  ;;  %v1525_v18 = vld [vmem:[%s2211_s1 + $0x1d4] sm:$0x30]  ;;  %v1397_v20 = vld [vmem:[%s2211_s1 + $0x1d8] sm:$0x30] }
  0x2a   :  { %675 = vmatpush.bf16.msrb.mxu2 %v1236_v48  ;;  %v1388_v21 = vor.u32 %v1524_v16, %v1387_v15  ;;  %v1508_v22 = vld [vmem:[%s2211_s1 + $0x154] sm:$0xf]  ;;  %v1396_v24 = vor.u32 %v1525_v18, %v1395_v17  ;;  %v1400_v25 = vor.u32 %v1509_v19, %v1397_v20  ;;  %v1259_v29 = vld [vmem:[%s2211_s1 + $0x50] sm:$0xf]  ;;  %v1267_v31 = vld [vmem:[%s2211_s1 + $0x58] sm:$0xf] }
  0x2b   :  { %688 = vmatpush.bf16.msrb.mxu3 %v1240_v49  ;;  %662 = vmatpush.bf16.msrb.mxu1 %v1232_v50  ;;  %v1389_v23 = vld [vmem:[%s2211_s1 + $0x1d0] sm:$0x30]  ;;  %v1492_v30 = vld [vmem:[%s2211_s1 + $0xcc] sm:$0xf0]  ;;  %v1493_v32 = vld [vmem:[%s2211_s1 + $0xd4] sm:$0xf0] }
  0x2c   :  { %v1392_v26 = vor.u32 %v1508_v22, %v1389_v23  ;;  %v451_v27 = vsel %vm389_vm1, %v1388_v21, 0  ;;  %v457_v33 = vsel %vm389_vm1, %v1396_v24, 0  ;;  %v460_v34 = vsel %vm389_vm1, %v1400_v25, 0  ;;  %v1477_v35 = vld [vmem:[%s2211_s1 + $0x5c] sm:$0xf] }
  0x2d   :  { %v1269_v36 = vld [vmem:[%s2211_s1 + $0xd8] sm:$0xf0]  ;;  %v1260_v38 = vor.u32 %v1492_v30, %v1259_v29  ;;  %v1476_v39 = vld [vmem:[%s2211_s1 + $0x54] sm:$0xf]  ;;  %v1268_v41 = vor.u32 %v1493_v32, %v1267_v31  ;;  %v1403_v44 = vld [vmem:[%s2211_s1 + $0x160] sm:$0xf] }
  0x2e   :  { %v454_v37 = vsel %vm389_vm1, %v1392_v26, 0  ;;  %v1261_v40 = vld [vmem:[%s2211_s1 + $0xd0] sm:$0xf0]  ;;  %v1272_v42 = vor.u32 %v1477_v35, %v1269_v36  ;;  %v1526_v45 = vld [vmem:[%s2211_s1 + $0x1dc] sm:$0x30] }
  0x2f   :  { %v1264_v43 = vor.u32 %v1476_v39, %v1261_v40  ;;  %v1411_v46 = vld [vmem:[%s2211_s1 + $0x168] sm:$0xf]  ;;  %v1511_v48 = vld [vmem:[%s2211_s1 + $0x16c] sm:$0xf]  ;;  %v1404_v50 = vor.u32 %v1526_v45, %v1403_v44  ;;  %v1510_v51 = vld [vmem:[%s2211_s1 + $0x164] sm:$0xf] }
  0x30   :  { %v1527_v47 = vld [vmem:[%s2211_s1 + $0x1e4] sm:$0x30]  ;;  %v1413_v49 = vld [vmem:[%s2211_s1 + $0x1e8] sm:$0x30]  ;;  %v1405_v52 = vld [vmem:[%s2211_s1 + $0x1e0] sm:$0x30] }
  0x31   :  { %v1412_v53 = vor.u32 %v1527_v47, %v1411_v46  ;;  %v1416_v54 = vor.u32 %v1511_v48, %v1413_v49  ;;  %v1408_v55 = vor.u32 %v1510_v51, %v1405_v52  ;;  %v463_v56 = vsel %vm389_vm1, %v1404_v50, 0  ;;  %v1275_v57 = vld [vmem:[%s2211_s1 + $0x60] sm:$0xf]  ;;  %v1283_v59 = vld [vmem:[%s2211_s1 + $0x68] sm:$0xf] }
  0x32   :  { %v1494_v58 = vld [vmem:[%s2211_s1 + $0xdc] sm:$0xf0]  ;;  %v1495_v60 = vld [vmem:[%s2211_s1 + $0xe4] sm:$0xf0]  ;;  %v1285_v0 = vld [vmem:[%s2211_s1 + $0xe8] sm:$0xf0] }
  0x33   :  { %v469_v61 = vsel %vm389_vm1, %v1412_v53, 0  ;;  %v472_v62 = vsel %vm389_vm1, %v1416_v54, 0  ;;  %v466_v1 = vsel %vm389_vm1, %v1408_v55, 0  ;;  %v1276_v2 = vor.u32 %v1494_v58, %v1275_v57  ;;  %v1478_v3 = vld [vmem:[%s2211_s1 + $0x64] sm:$0xf] }
  0x34   :  { %1441 = vmatmul.msk.bf16.vlgmr.msra.gmra.mxu0 %vm385_vm2, %v1638_v28  ;;  %1442 = vmatmul.msk.bf16.vlgmr.msra.gmra.mxu1 %vm385_vm2, %v1638_v28  ;;  %v1427_v10 = vld [vmem:[%s2211_s1 + $0x178] sm:$0xf]  ;;  %v1512_v15 = vld [vmem:[%s2211_s1 + $0x174] sm:$0xf]  ;;  %v1291_v21 = vld [vmem:[%s2211_s1 + $0x70] sm:$0xf] }
  0x35   :  { %700 = vmatpush.bf16.msra.mxu0 %v439_v63  ;;  %1443 = vmatmul.msk.bf16.vlgmr.msra.gmra.mxu2 %vm385_vm2, %v1638_v28  ;;  %v1479_v63 = vld [vmem:[%s2211_s1 + $0x6c] sm:$0xf]  ;;  %v1529_v11 = vld [vmem:[%s2211_s1 + $0x1f4] sm:$0x30]  ;;  %v1421_v16 = vld [vmem:[%s2211_s1 + $0x1f0] sm:$0x30] }
  0x36   :  { %1444 = vmatmul.msk.bf16.vlgmr.msra.gmra.mxu3 %vm385_vm2, %v1638_v28  ;;  %726 = vmatpush.bf16.msra.mxu2 %v445_v4  ;;  %v1277_v4 = vld [vmem:[%s2211_s1 + $0xe0] sm:$0xf0]  ;;  %v1288_v6 = vor.u32 %v1479_v63, %v1285_v0  ;;  %v1428_v17 = vor.u32 %v1529_v11, %v1427_v10  ;;  %v1424_v19 = vor.u32 %v1512_v15, %v1421_v16  ;;  %v1496_v22 = vld [vmem:[%s2211_s1 + $0xec] sm:$0xf0]  ;;  %v1299_v23 = vld [vmem:[%s2211_s1 + $0x78] sm:$0xf] }
  0x37   :  { %739 = vmatpush.bf16.msra.mxu3 %v448_v5  ;;  %713 = vmatpush.bf16.msra.mxu1 %v442_v8  ;;  %v1284_v5 = vor.u32 %v1495_v60, %v1283_v59  ;;  %v1280_v7 = vor.u32 %v1478_v3, %v1277_v4  ;;  %v1419_v8 = vld [vmem:[%s2211_s1 + $0x170] sm:$0xf]  ;;  %v1497_v24 = vld [vmem:[%s2211_s1 + $0xf4] sm:$0xf0]  ;;  %v1301_v29 = vld [vmem:[%s2211_s1 + $0xf8] sm:$0xf0]  ;;  %v1292_v31 = vor.u32 %v1496_v22, %v1291_v21 }
  0x38   :  { %v481_v25 = vsel %vm389_vm1, %v1428_v17, 0  ;;  %v478_v30 = vsel %vm389_vm1, %v1424_v19, 0  ;;  %v1480_v32 = vld [vmem:[%s2211_s1 + $0x74] sm:$0xf] }
  0x39   :  { %701 = vmatpush.bf16.msra.mxu0 %v1244_v9  ;;  %v1528_v9 = vld [vmem:[%s2211_s1 + $0x1ec] sm:$0x30] }
  0x3a   :  { %727 = vmatpush.bf16.msra.mxu2 %v1252_v12  ;;  %v1513_v12 = vld [vmem:[%s2211_s1 + $0x17c] sm:$0xf] }
  0x3b   :  { %740 = vmatpush.bf16.msra.mxu3 %v1256_v13  ;;  %714 = vmatpush.bf16.msra.mxu1 %v1248_v14  ;;  %v1429_v13 = vld [vmem:[%s2211_s1 + $0x1f8] sm:$0x30]  ;;  %v1420_v14 = vor.u32 %v1528_v9, %v1419_v8 }
  0x3c   :  { %v1432_v18 = vor.u32 %v1513_v12, %v1429_v13 }
  0x3d   :  { %v475_v20 = vsel %vm389_vm1, %v1420_v14, 0  ;;  %v903_v14 = vld [vmem:[%s2213_s3 + $0x8] sm:$0xff] }
  0x3e   :  { %v484_v26 = vsel %vm389_vm1, %v1432_v18, 0  ;;  %v918_v15 = vperm.slane %v903_v14, 0  ;;  %v919_v16 = vperm.slane %v903_v14, 1 }
  0x44   :  { %1445 = vmatmul.msk.bf16.vlgmr.msrb.gmra.mxu0 %vm385_vm2, %v1638_v28  ;;  %1446 = vmatmul.msk.bf16.vlgmr.msrb.gmra.mxu1 %vm385_vm2, %v1638_v28 }
  0x45   :  { %752 = vmatpush.bf16.msrb.mxu0 %v451_v27  ;;  %1447 = vmatmul.msk.bf16.vlgmr.msrb.gmra.mxu2 %vm385_vm2, %v1638_v28  ;;  %v1481_v27 = vld [vmem:[%s2211_s1 + $0x7c] sm:$0xf] }
  0x46   :  { %1448 = vmatmul.msk.bf16.vlgmr.msrb.gmra.mxu3 %vm385_vm2, %v1638_v28  ;;  %778 = vmatpush.bf16.msrb.mxu2 %v457_v33  ;;  %v1293_v33 = vld [vmem:[%s2211_s1 + $0xf0] sm:$0xf0]  ;;  %v1304_v35 = vor.u32 %v1481_v27, %v1301_v29 }
  0x47   :  { %791 = vmatpush.bf16.msrb.mxu3 %v460_v34  ;;  %765 = vmatpush.bf16.msrb.mxu1 %v454_v37  ;;  %v1300_v34 = vor.u32 %v1497_v24, %v1299_v23  ;;  %v1296_v36 = vor.u32 %v1480_v32, %v1293_v33  ;;  %v902_v37 = vld [vmem:[%s2213_s3] sm:$0xff] }
  0x48   :  { %v911_v39 = vperm.slane %v902_v37, 1  ;;  %v912_v47 = vperm.slane %v902_v37, 2  ;;  %v913_v48 = vperm.slane %v902_v37, 3  ;;  %v914_v59 = vperm.slane %v902_v37, 4 }
  0x49   :  { %753 = vmatpush.bf16.msrb.mxu0 %v1260_v38  ;;  %v910_v38 = vperm.slane %v902_v37, 0  ;;  %v915_v60 = vperm.slane %v902_v37, 5 }
  0x4a   :  { %779 = vmatpush.bf16.msrb.mxu2 %v1268_v41 }
  0x4b   :  { %792 = vmatpush.bf16.msrb.mxu3 %v1272_v42  ;;  %766 = vmatpush.bf16.msrb.mxu1 %v1264_v43 }
  0x54   :  { %1449 = vmatmul.msk.bf16.vlgmr.msra.gmra.mxu0 %vm385_vm2, %v1638_v28  ;;  %1450 = vmatmul.msk.bf16.vlgmr.msra.gmra.mxu1 %vm385_vm2, %v1638_v28 }
  0x55   :  { %804 = vmatpush.bf16.msra.mxu0 %v463_v56  ;;  %1451 = vmatmul.msk.bf16.vlgmr.msra.gmra.mxu2 %vm385_vm2, %v1638_v28 }
  0x56   :  { %1452 = vmatmul.msk.bf16.vlgmr.msra.gmra.mxu3 %vm385_vm2, %v1638_v28  ;;  %830 = vmatpush.bf16.msra.mxu2 %v469_v61 }
  0x57   :  { %843 = vmatpush.bf16.msra.mxu3 %v472_v62  ;;  %817 = vmatpush.bf16.msra.mxu1 %v466_v1 }
  0x59   :  { %805 = vmatpush.bf16.msra.mxu0 %v1276_v2 }
  0x5a   :  { %831 = vmatpush.bf16.msra.mxu2 %v1284_v5  ;;  %v916_v5 = vperm.slane %v902_v37, 6 }
  0x5b   :  { %844 = vmatpush.bf16.msra.mxu3 %v1288_v6  ;;  %818 = vmatpush.bf16.msra.mxu1 %v1280_v7  ;;  %v917_v6 = vperm.slane %v902_v37, 7 }
  0x64   :  { %1453 = vmatmul.msk.bf16.vlgmr.msrb.gmra.mxu0 %vm385_vm2, %v1638_v28  ;;  %1454 = vmatmul.msk.bf16.vlgmr.msrb.gmra.mxu1 %vm385_vm2, %v1638_v28 }
  0x65   :  { %856 = vmatpush.bf16.msrb.mxu0 %v475_v20  ;;  %1455 = vmatmul.msk.bf16.vlgmr.msrb.gmra.mxu2 %vm385_vm2, %v1638_v28 }
  0x66   :  { %1456 = vmatmul.msk.bf16.vlgmr.msrb.gmra.mxu3 %vm385_vm2, %v1638_v28  ;;  %882 = vmatpush.bf16.msrb.mxu2 %v481_v25  ;;  %v920_v25 = vperm.slane %v903_v14, 2 }
  0x67   :  { %895 = vmatpush.bf16.msrb.mxu3 %v484_v26  ;;  %869 = vmatpush.bf16.msrb.mxu1 %v478_v30  ;;  %v921_v26 = vperm.slane %v903_v14, 3 }
  0x69   :  { %857 = vmatpush.bf16.msrb.mxu0 %v1292_v31 }
  0x6a   :  { %883 = vmatpush.bf16.msrb.mxu2 %v1300_v34 }
  0x6b   :  { %896 = vmatpush.bf16.msrb.mxu3 %v1304_v35  ;;  %870 = vmatpush.bf16.msrb.mxu1 %v1296_v36 }
  0x74   :  { %1457 = vmatmul.msk.bf16.vlgmr.msra.gmra.mxu0 %vm385_vm2, %v1638_v28  ;;  %1458 = vmatmul.msk.bf16.vlgmr.msra.gmra.mxu1 %vm385_vm2, %v1638_v28 }
  0x75   :  { %1459 = vmatmul.msk.bf16.vlgmr.msra.gmra.mxu2 %vm385_vm2, %v1638_v28 }
  0x76   :  { %1460 = vmatmul.msk.bf16.vlgmr.msra.gmra.mxu3 %vm385_vm2, %v1638_v28 }
  0x84   :  { %1461 = vmatmul.msk.bf16.vlgmr.msrb.gmra.mxu0 %vm385_vm2, %v1638_v28  ;;  %1462 = vmatmul.msk.bf16.vlgmr.msrb.gmra.mxu1 %vm385_vm2, %v1638_v28 }
  0x85   :  { %1463 = vmatmul.msk.bf16.vlgmr.msrb.gmra.mxu2 %vm385_vm2, %v1638_v28 }
  0x86   :  { %1464 = vmatmul.msk.bf16.vlgmr.msrb.gmra.mxu3 %vm385_vm2, %v1638_v28 }
  0x91   :  { %v495_v40 = vpop.f32.mrf.mxu0  ;;  %v508_v42 = vpop.f32.mrf.mxu1 }
  0x92   :  { %v974_v41 = vmul.f32 %v910_v38, %v495_v40  ;;  %v975_v43 = vmul.f32 %v911_v39, %v508_v42  ;;  %v922_v38 = vperm.slane %v903_v14, 4  ;;  %v923_v39 = vperm.slane %v903_v14, 5 }
  0x94   :  { %v1076_v44 = vmul.f32 %v974_v41, %v974_v41  ;;  %v1006_v45 = vpack.c.bf16 %v975_v43, %v974_v41  ;;  %v1077_v46 = vmul.f32 %v975_v43, %v975_v43  ;;  %v1039_v24 = vadd.f32 %v975_v43, %v974_v41 }
  0x96   :  { %1022 = vst [vmem:[%s2214_s4] sm:$0xff] %v1006_v45  ;;  %v1108_v28 = vadd.f32 %v1077_v46, %v1076_v44 }
  0x98   :  { %v521_v49 = vpop.f32.mrf.mxu2 }
  0x99   :  { %v534_v50 = vpop.f32.mrf.mxu3  ;;  %v976_v51 = vmul.f32 %v912_v47, %v521_v49  ;;  %v497_v53 = vpop.f32.mrf.mxu0 }
  0x9a   :  { %v977_v52 = vmul.f32 %v913_v48, %v534_v50  ;;  %v510_v54 = vpop.f32.mrf.mxu1  ;;  %v925_v53 = vperm.slane %v903_v14, 7 }
  0x9b   :  { %v1078_v55 = vmul.f32 %v976_v51, %v976_v51  ;;  %v1040_v27 = vadd.f32 %v1039_v24, %v976_v51 }
  0x9c   :  { %v1007_v56 = vpack.c.bf16 %v977_v52, %v976_v51  ;;  %v1079_v57 = vmul.f32 %v977_v52, %v977_v52 }
  0x9d   :  { %v1109_v58 = vadd.f32 %v1108_v28, %v1078_v55  ;;  %v1041_v35 = vadd.f32 %v1040_v27, %v977_v52  ;;  %v924_v52 = vperm.slane %v903_v14, 6 }
  0x9e   :  { %1023 = vst [vmem:[%s2214_s4 + $0x8] sm:$0xff] %v1007_v56 }
  0x9f   :  { %v1110_v61 = vadd.f32 %v1109_v58, %v1079_v57 }
  0xa0   :  { %v523_v62 = vpop.f32.mrf.mxu2 }
  0xa1   :  { %v536_v63 = vpop.f32.mrf.mxu3  ;;  %v547_v0 = vpop.f32.mrf.mxu0 }
  0xa2   :  { %v560_v1 = vpop.f32.mrf.mxu1  ;;  %v978_v2 = vmul.f32 %v914_v59, %v547_v0 }
  0xa3   :  { %v979_v3 = vmul.f32 %v915_v60, %v560_v1 }
  0xa4   :  { %v1042_v37 = vadd.f32 %v1041_v35, %v978_v2  ;;  %v1080_v40 = vmul.f32 %v978_v2, %v978_v2 }
  0xa5   :  { %v1008_v4 = vpack.c.bf16 %v979_v3, %v978_v2  ;;  %v1081_v28 = vmul.f32 %v979_v3, %v979_v3 }
  0xa6   :  { %v1043_v43 = vadd.f32 %v1042_v37, %v979_v3  ;;  %v1111_v48 = vadd.f32 %v1110_v61, %v1080_v40  ;;  %v2098_v3 = vld [vmem:[%s2213_s3 + $0x10] sm:$0xff] }
  0xa7   :  { %1024 = vst [vmem:[%s2214_s4 + $0x10] sm:$0xff] %v1008_v4 }
  0xa8   :  { %v573_v7 = vpop.f32.mrf.mxu2  ;;  %v1112_v54 = vadd.f32 %v1111_v48, %v1081_v28 }
  0xa9   :  { %v586_v8 = vpop.f32.mrf.mxu3  ;;  %v980_v9 = vmul.f32 %v916_v5, %v573_v7  ;;  %v549_v11 = vpop.f32.mrf.mxu0  ;;  %v927_v7 = vperm.slane %v2098_v3, 1 }
  0xaa   :  { %v981_v10 = vmul.f32 %v917_v6, %v586_v8  ;;  %v562_v12 = vpop.f32.mrf.mxu1  ;;  %v926_v6 = vperm.slane %v2098_v3, 0 }
  0xab   :  { %v1044_v49 = vadd.f32 %v1043_v43, %v980_v9  ;;  %v1082_v51 = vmul.f32 %v980_v9, %v980_v9 }
  0xac   :  { %v1009_v13 = vpack.c.bf16 %v981_v10, %v980_v9  ;;  %v1083_v56 = vmul.f32 %v981_v10, %v981_v10 }
  0xad   :  { %v1045_v55 = vadd.f32 %v1044_v49, %v981_v10  ;;  %v1113_v59 = vadd.f32 %v1112_v54, %v1082_v51 }
  0xae   :  { %1025 = vst [vmem:[%s2214_s4 + $0x18] sm:$0xff] %v1009_v13 }
  0xaf   :  { %v1114_v4 = vadd.f32 %v1113_v59, %v1083_v56 }
  0xb0   :  { %v575_v17 = vpop.f32.mrf.mxu2 }
  0xb1   :  { %v588_v18 = vpop.f32.mrf.mxu3  ;;  %v599_v19 = vpop.f32.mrf.mxu0 }
  0xb2   :  { %v612_v20 = vpop.f32.mrf.mxu1  ;;  %v982_v21 = vmul.f32 %v918_v15, %v599_v19 }
  0xb3   :  { %v983_v22 = vmul.f32 %v919_v16, %v612_v20 }
  0xb4   :  { %v1046_v60 = vadd.f32 %v1045_v55, %v982_v21  ;;  %v1084_v1 = vmul.f32 %v982_v21, %v982_v21 }
  0xb5   :  { %v1010_v23 = vpack.c.bf16 %v983_v22, %v982_v21  ;;  %v1085_v9 = vmul.f32 %v983_v22, %v983_v22  ;;  %v928_v21 = vperm.slane %v2098_v3, 2 }
  0xb6   :  { %v1047_v5 = vadd.f32 %v1046_v60, %v983_v22  ;;  %v1115_v8 = vadd.f32 %v1114_v4, %v1084_v1 }
  0xb7   :  { %1026 = vst [vmem:[%s2214_s4 + $0x20] sm:$0xff] %v1010_v23 }
  0xb8   :  { %v625_v29 = vpop.f32.mrf.mxu2  ;;  %v1116_v18 = vadd.f32 %v1115_v8, %v1085_v9 }
  0xb9   :  { %v638_v30 = vpop.f32.mrf.mxu3  ;;  %v984_v31 = vmul.f32 %v920_v25, %v625_v29  ;;  %v601_v33 = vpop.f32.mrf.mxu0 }
  0xba   :  { %v985_v32 = vmul.f32 %v921_v26, %v638_v30  ;;  %v614_v34 = vpop.f32.mrf.mxu1  ;;  %v929_v26 = vperm.slane %v2098_v3, 3 }
  0xbb   :  { %v1048_v10 = vadd.f32 %v1047_v5, %v984_v31  ;;  %v1086_v13 = vmul.f32 %v984_v31, %v984_v31 }
  0xbc   :  { %v1011_v36 = vpack.c.bf16 %v985_v32, %v984_v31  ;;  %v1087_v24 = vmul.f32 %v985_v32, %v985_v32 }
  0xbd   :  { %v1049_v19 = vadd.f32 %v1048_v10, %v985_v32  ;;  %v1117_v23 = vadd.f32 %v1116_v18, %v1086_v13 }
  0xbe   :  { %1027 = vst [vmem:[%s2214_s4 + $0x28] sm:$0xff] %v1011_v36 }
  0xbf   :  { %v1118_v30 = vadd.f32 %v1117_v23, %v1087_v24 }
  0xc0   :  { %v627_v41 = vpop.f32.mrf.mxu2 }
  0xc1   :  { %v640_v42 = vpop.f32.mrf.mxu3  ;;  %v651_v44 = vpop.f32.mrf.mxu0  ;;  %v930_v41 = vperm.slane %v2098_v3, 4 }
  0xc2   :  { %v664_v45 = vpop.f32.mrf.mxu1  ;;  %v986_v46 = vmul.f32 %v922_v38, %v651_v44  ;;  %v931_v42 = vperm.slane %v2098_v3, 5 }
  0xc3   :  { %v987_v47 = vmul.f32 %v923_v39, %v664_v45 }
  0xc4   :  { %v1050_v25 = vadd.f32 %v1049_v19, %v986_v46  ;;  %v1088_v22 = vmul.f32 %v986_v46, %v986_v46 }
  0xc5   :  { %v1012_v50 = vpack.c.bf16 %v987_v47, %v986_v46  ;;  %v1089_v38 = vmul.f32 %v987_v47, %v987_v47 }
  0xc6   :  { %v1051_v31 = vadd.f32 %v1050_v25, %v987_v47  ;;  %v1119_v37 = vadd.f32 %v1118_v30, %v1088_v22 }
  0xc7   :  { %1028 = vst [vmem:[%s2214_s4 + $0x30] sm:$0xff] %v1012_v50 }
  0xc8   :  { %v677_v57 = vpop.f32.mrf.mxu2  ;;  %v1120_v43 = vadd.f32 %v1119_v37, %v1089_v38 }
  0xc9   :  { %v690_v58 = vpop.f32.mrf.mxu3  ;;  %v988_v62 = vmul.f32 %v924_v52, %v677_v57  ;;  %v653_v61 = vpop.f32.mrf.mxu0  ;;  %v932_v57 = vperm.slane %v2098_v3, 6 }
  0xca   :  { %v989_v63 = vmul.f32 %v925_v53, %v690_v58  ;;  %v666_v0 = vpop.f32.mrf.mxu1  ;;  %v933_v58 = vperm.slane %v2098_v3, 7  ;;  %v2123_v3 = vld [vmem:[%s2213_s3 + $0x18] sm:$0xff] }
  0xcb   :  { %v1052_v39 = vadd.f32 %v1051_v31, %v988_v62  ;;  %v1090_v40 = vmul.f32 %v988_v62, %v988_v62  ;;  %v935_v13 = vperm.slane %v2123_v3, 1  ;;  %v937_v30 = vperm.slane %v2123_v3, 3 }
  0xcc   :  { %v1013_v2 = vpack.c.bf16 %v989_v63, %v988_v62  ;;  %v1091_v28 = vmul.f32 %v989_v63, %v989_v63 }
  0xcd   :  { %v1053_v44 = vadd.f32 %v1052_v39, %v989_v63  ;;  %v1121_v48 = vadd.f32 %v1120_v43, %v1090_v40 }
  0xce   :  { %1029 = vst [vmem:[%s2214_s4 + $0x38] sm:$0xff] %v1013_v2 }
  0xcf   :  { %v1122_v55 = vadd.f32 %v1121_v48, %v1091_v28  ;;  %v939_v48 = vperm.slane %v2123_v3, 5 }
  0xd0   :  { %v679_v11 = vpop.f32.mrf.mxu2 }
  0xd1   :  { %v692_v12 = vpop.f32.mrf.mxu3  ;;  %v703_v14 = vpop.f32.mrf.mxu0 }
  0xd2   :  { %v716_v15 = vpop.f32.mrf.mxu1  ;;  %v990_v16 = vmul.f32 %v926_v6, %v703_v14  ;;  %v934_v12 = vperm.slane %v2123_v3, 0 }
  0xd3   :  { %v991_v17 = vmul.f32 %v927_v7, %v716_v15 }
  0xd4   :  { %v1054_v49 = vadd.f32 %v1053_v44, %v990_v16  ;;  %v1092_v53 = vmul.f32 %v990_v16, %v990_v16 }
  0xd5   :  { %v1014_v20 = vpack.c.bf16 %v991_v17, %v990_v16  ;;  %v1093_v60 = vmul.f32 %v991_v17, %v991_v17 }
  0xd6   :  { %v1055_v56 = vadd.f32 %v1054_v49, %v991_v17  ;;  %v1123_v59 = vadd.f32 %v1122_v55, %v1092_v53 }
  0xd7   :  { %1030 = vst [vmem:[%s2214_s4 + $0x40] sm:$0xff] %v1014_v20 }
  0xd8   :  { %v729_v27 = vpop.f32.mrf.mxu2  ;;  %v1124_v6 = vadd.f32 %v1123_v59, %v1093_v60  ;;  %v940_v60 = vperm.slane %v2123_v3, 6 }
  0xd9   :  { %v742_v29 = vpop.f32.mrf.mxu3  ;;  %v992_v33 = vmul.f32 %v928_v21, %v729_v27  ;;  %v705_v35 = vpop.f32.mrf.mxu0 }
  0xda   :  { %v993_v34 = vmul.f32 %v929_v26, %v742_v29  ;;  %v718_v36 = vpop.f32.mrf.mxu1  ;;  %v936_v29 = vperm.slane %v2123_v3, 2 }
  0xdb   :  { %v1056_v62 = vadd.f32 %v1055_v56, %v992_v33  ;;  %v1094_v0 = vmul.f32 %v992_v33, %v992_v33 }
  0xdc   :  { %v1015_v32 = vpack.c.bf16 %v993_v34, %v992_v33  ;;  %v1095_v10 = vmul.f32 %v993_v34, %v993_v34 }
  0xdd   :  { %v1057_v7 = vadd.f32 %v1056_v62, %v993_v34  ;;  %v1125_v9 = vadd.f32 %v1124_v6, %v1094_v0  ;;  %v941_v0 = vperm.slane %v2123_v3, 7 }
  0xde   :  { %1031 = vst [vmem:[%s2214_s4 + $0x48] sm:$0xff] %v1015_v32 }
  0xdf   :  { %v1126_v17 = vadd.f32 %v1125_v9, %v1095_v10 }
  0xe0   :  { %v731_v45 = vpop.f32.mrf.mxu2 }
  0xe1   :  { %v744_v46 = vpop.f32.mrf.mxu3  ;;  %v755_v50 = vpop.f32.mrf.mxu0 }
  0xe2   :  { %v768_v47 = vpop.f32.mrf.mxu1  ;;  %v994_v51 = vmul.f32 %v930_v41, %v755_v50  ;;  %v938_v46 = vperm.slane %v2123_v3, 4 }
  0xe3   :  { %v995_v52 = vmul.f32 %v931_v42, %v768_v47 }
  0xe4   :  { %v1058_v11 = vadd.f32 %v1057_v7, %v994_v51  ;;  %v1096_v14 = vmul.f32 %v994_v51, %v994_v51 }
  0xe5   :  { %v1016_v54 = vpack.c.bf16 %v995_v52, %v994_v51  ;;  %v1097_v25 = vmul.f32 %v995_v52, %v995_v52 }
  0xe6   :  { %v1059_v18 = vadd.f32 %v1058_v11, %v995_v52  ;;  %v1127_v24 = vadd.f32 %v1126_v17, %v1096_v14 }
  0xe7   :  { %1032 = vst [vmem:[%s2214_s4 + $0x50] sm:$0xff] %v1016_v54 }
  0xe8   :  { %v781_v63 = vpop.f32.mrf.mxu2  ;;  %v1128_v31 = vadd.f32 %v1127_v24, %v1097_v25 }
  0xe9   :  { %v794_v61 = vpop.f32.mrf.mxu3  ;;  %v996_v1 = vmul.f32 %v932_v57, %v781_v63  ;;  %v757_v4 = vpop.f32.mrf.mxu0 }
  0xea   :  { %v997_v2 = vmul.f32 %v933_v58, %v794_v61  ;;  %v770_v5 = vpop.f32.mrf.mxu1 }
  0xeb   :  { %v1060_v26 = vadd.f32 %v1059_v18, %v996_v1  ;;  %v1098_v27 = vmul.f32 %v996_v1, %v996_v1 }
  0xec   :  { %v1017_v8 = vpack.c.bf16 %v997_v2, %v996_v1  ;;  %v1099_v34 = vmul.f32 %v997_v2, %v997_v2 }
  0xed   :  { %v1061_v33 = vadd.f32 %v1060_v26, %v997_v2  ;;  %v1129_v37 = vadd.f32 %v1128_v31, %v1098_v27  ;;  %v1075_v26 = vld [vmem:[%s2216_s6] sm:$0xff] }
  0xee   :  { %1033 = vst [vmem:[%s2214_s4 + $0x58] sm:$0xff] %v1017_v8 }
  0xef   :  { %v1130_v44 = vadd.f32 %v1129_v37, %v1099_v34 }
  0xf0   :  { %v783_v15 = vpop.f32.mrf.mxu2 }
  0xf1   :  { %v796_v16 = vpop.f32.mrf.mxu3  ;;  %v807_v19 = vpop.f32.mrf.mxu0 }
  0xf2   :  { %v820_v20 = vpop.f32.mrf.mxu1  ;;  %v998_v21 = vmul.f32 %v934_v12, %v807_v19 }
  0xf3   :  { %v999_v23 = vmul.f32 %v935_v13, %v820_v20 }
  0xf4   :  { %v1062_v38 = vadd.f32 %v1061_v33, %v998_v21  ;;  %v1100_v42 = vmul.f32 %v998_v21, %v998_v21 }
  0xf5   :  { %v1018_v22 = vpack.c.bf16 %v999_v23, %v998_v21  ;;  %v1101_v49 = vmul.f32 %v999_v23, %v999_v23 }
  0xf6   :  { %v1063_v45 = vadd.f32 %v1062_v38, %v999_v23  ;;  %v1131_v28 = vadd.f32 %v1130_v44, %v1100_v42  ;;  %v1038_v23 = vld [vmem:[%s2215_s5] sm:$0xff] }
  0xf7   :  { %1034 = vst [vmem:[%s2214_s4 + $0x60] sm:$0xff] %v1018_v22 }
  0xf8   :  { %v833_v35 = vpop.f32.mrf.mxu2  ;;  %v1132_v57 = vadd.f32 %v1131_v28, %v1101_v49 }
  0xf9   :  { %v846_v36 = vpop.f32.mrf.mxu3  ;;  %v1000_v39 = vmul.f32 %v936_v29, %v833_v35  ;;  %v809_v40 = vpop.f32.mrf.mxu0 }
  0xfa   :  { %v1001_v32 = vmul.f32 %v937_v30, %v846_v36  ;;  %v822_v41 = vpop.f32.mrf.mxu1 }
  0xfb   :  { %v1064_v50 = vadd.f32 %v1063_v45, %v1000_v39  ;;  %v1102_v52 = vmul.f32 %v1000_v39, %v1000_v39 }
  0xfc   :  { %v1019_v43 = vpack.c.bf16 %v1001_v32, %v1000_v39  ;;  %v1103_v63 = vmul.f32 %v1001_v32, %v1001_v32 }
  0xfd   :  { %v1065_v58 = vadd.f32 %v1064_v50, %v1001_v32  ;;  %v1133_v62 = vadd.f32 %v1132_v57, %v1102_v52 }
  0xfe   :  { %1035 = vst [vmem:[%s2214_s4 + $0x68] sm:$0xff] %v1019_v43 }
  0xff   :  { %v1134_v5 = vadd.f32 %v1133_v62, %v1103_v63 }
 0x100   :  { %v835_v47 = vpop.f32.mrf.mxu2 }
 0x101   :  { %v848_v51 = vpop.f32.mrf.mxu3  ;;  %v859_v53 = vpop.f32.mrf.mxu0 }
 0x102   :  { %v872_v54 = vpop.f32.mrf.mxu1  ;;  %v1002_v55 = vmul.f32 %v938_v46, %v859_v53 }
 0x103   :  { %v1003_v56 = vmul.f32 %v939_v48, %v872_v54 }
 0x104   :  { %v1066_v61 = vadd.f32 %v1065_v58, %v1002_v55  ;;  %v1104_v1 = vmul.f32 %v1002_v55, %v1002_v55 }
 0x105   :  { %v1020_v59 = vpack.c.bf16 %v1003_v56, %v1002_v55  ;;  %v1105_v12 = vmul.f32 %v1003_v56, %v1003_v56 }
 0x106   :  { %v1067_v10 = vadd.f32 %v1066_v61, %v1003_v56  ;;  %v1135_v11 = vadd.f32 %v1134_v5, %v1104_v1 }
 0x107   :  { %1036 = vst [vmem:[%s2214_s4 + $0x70] sm:$0xff] %v1020_v59 }
 0x108   :  { %v885_v2 = vpop.f32.mrf.mxu2  ;;  %v1136_v16 = vadd.f32 %v1135_v11, %v1105_v12 }
 0x109   :  { %v898_v4 = vpop.f32.mrf.mxu3  ;;  %v1004_v6 = vmul.f32 %v940_v60, %v885_v2  ;;  %v861_v8 = vpop.f32.mrf.mxu0 }
 0x10a   :  { %v1005_v7 = vmul.f32 %v941_v0, %v898_v4  ;;  %v874_v9 = vpop.f32.mrf.mxu1 }
 0x10b   :  { %v1068_v14 = vadd.f32 %v1067_v10, %v1004_v6  ;;  %v1106_v15 = vmul.f32 %v1004_v6, %v1004_v6 }
 0x10c   :  { %v1021_v13 = vpack.c.bf16 %v1005_v7, %v1004_v6  ;;  %v1107_v19 = vmul.f32 %v1005_v7, %v1005_v7 }
 0x10d   :  { %v1069_v3 = vadd.f32 %v1068_v14, %v1005_v7  ;;  %v1137_v20 = vadd.f32 %v1136_v16, %v1106_v15 }
 0x10e   :  { %1037 = vst [vmem:[%s2214_s4 + $0x78] sm:$0xff] %v1021_v13 }
 0x10f   :  { %1070 = vadd.xlane.f32.xlu0 %v1069_v3  ;;  %v1138_v21 = vadd.f32 %v1137_v20, %v1107_v19 }
 0x110   :  { %v887_v17 = vpop.f32.mrf.mxu2 }
 0x111   :  { %v900_v18 = vpop.f32.mrf.mxu3 }
 0x117   :  { %1139 = vadd.xlane.f32.xlu0 %v1138_v21 }
 0x182   :  { %v1071_v24 = vpop.xlane.xlu0 %1070 }
 0x183   :  { %v1072_v25 = vadd.f32 %v1071_v24, %v1038_v23 }
 0x185   :  { %1074 = vst.msk [vmem:[%s2215_s5] sm:$0xff] %vm24_vm0, %v1072_v25 }
 0x18a   :  { %v1140_v22 = vpop.xlane.xlu0 %1139 }
 0x18b   :  { %v1141_v27 = vadd.f32 %v1140_v22, %v1075_v26 }
 0x18d   :  { %1142 = vst.msk [vmem:[%s2216_s6] sm:$0xff] %vm24_vm0, %v1141_v27 }
 0x18e PF:  { %s1143_s21 = sld [smem:[#allocation3]] }
 0x194   :  { %p1465_p1 = scmp.ne.s32.totalorder %s1143_s21, 0 }
 0x196   :  { %1147 = sbr.rel (%p1465_p1) target bundleno = 428 (0x1ac), region = 25 }
 0x19b   :  { %v1533_v29 = vmov 0  }
 0x19c   :  { %1148 = vst [vmem:[%s2214_s4] sm:$0xff] %v1533_v29 }
 0x19d   :  { %1149 = vst [vmem:[%s2214_s4 + $0x8] sm:$0xff] %v1533_v29 }
 0x19e   :  { %1150 = vst [vmem:[%s2214_s4 + $0x10] sm:$0xff] %v1533_v29 }
 0x19f   :  { %1151 = vst [vmem:[%s2214_s4 + $0x18] sm:$0xff] %v1533_v29 }
 0x1a0   :  { %1152 = vst [vmem:[%s2214_s4 + $0x20] sm:$0xff] %v1533_v29 }
 0x1a1   :  { %1153 = vst [vmem:[%s2214_s4 + $0x28] sm:$0xff] %v1533_v29 }
 0x1a2   :  { %1154 = vst [vmem:[%s2214_s4 + $0x30] sm:$0xff] %v1533_v29 }
 0x1a3   :  { %1155 = vst [vmem:[%s2214_s4 + $0x38] sm:$0xff] %v1533_v29 }
 0x1a4   :  { %1156 = vst [vmem:[%s2214_s4 + $0x40] sm:$0xff] %v1533_v29 }
 0x1a5   :  { %1157 = vst [vmem:[%s2214_s4 + $0x48] sm:$0xff] %v1533_v29 }
 0x1a6   :  { %1158 = vst [vmem:[%s2214_s4 + $0x50] sm:$0xff] %v1533_v29 }
 0x1a7   :  { %1159 = vst [vmem:[%s2214_s4 + $0x58] sm:$0xff] %v1533_v29 }
 0x1a8   :  { %1160 = vst [vmem:[%s2214_s4 + $0x60] sm:$0xff] %v1533_v29 }
 0x1a9   :  { %1161 = vst [vmem:[%s2214_s4 + $0x68] sm:$0xff] %v1533_v29 }
 0x1aa   :  { %1162 = vst [vmem:[%s2214_s4 + $0x70] sm:$0xff] %v1533_v29 }
 0x1ab   :  { %1163 = vst [vmem:[%s2214_s4 + $0x78] sm:$0xff] %v1533_v29 }
 0x1ac PF:  {}

// kernel: squeeze.3
= control target key start
LH: loop header
LB: loop body
LE: loop exit
PB: predicated region body
PF: predicated region fallthrough
CT: control target
= control target key end

     0   :  { %vm6_vm0 = vcmask 1043458   ;;  %s11_s6 = smov 3  ;;  %s14_s7 = smov 12  ;;  %vm8_vm1 = vcmask 64512   ;;  %vm20_vm2 = vcmask 1048512   ;;  %vm32_vm3 = vcmask 982912   ;;  %s411_s0 = inlined_call_operand.vmem [shape: f32[2,1,4,8,8], index: 0, kind: input, shape index: {}]   ;;  %s412_s1 = inlined_call_operand.vmem [shape: f32[1,512], index: 1, kind: output, shape index: {}]  }
   0x1   :  { %v214_v0 = vld [vmem:[%s411_s0 + $0xf] ss:$16 sm:%s11_s6]   ;;  %s35_s12 = smov 3  ;;  %s38_s15 = smov 12  ;;  %vm44_vm4 = vcmask 917312   ;;  %vm56_vm5 = vcmask 851712  }
   0x2   :  { %v215_v1 = vld [vmem:[%s411_s0 + $0xf] ss:$16 sm:%s14_s7]   ;;  %v218_v3 = vld [vmem:[%s411_s0 + $0xd] ss:$16 sm:%s35_s12]   ;;  %s262_s16 = smov 120   ;;  %s23_s19 = smov 3 }
   0x3   :  { %v17_v2 = vsel %vm6_vm0, %v215_v1, %v214_v0  ;;  %v219_v4 = vld [vmem:[%s411_s0 + $0xd] ss:$16 sm:%s38_s15]   ;;  %s26_s20 = smov 12  ;;  %v216_v6 = vld [vmem:[%s411_s0 + $0xe] ss:$16 sm:%s23_s19]   ;;  %s47_s23 = smov 3 }
   0x4   :  { %18 = vrot.lane.b32.xlu0 %v17_v2, %s262_s16  ;;  %v41_v5 = vsel %vm6_vm0, %v219_v4, %v218_v3  ;;  %s263_s24 = smov 104   ;;  %v217_v7 = vld [vmem:[%s411_s0 + $0xe] ss:$16 sm:%s26_s20]   ;;  %s50_s27 = smov 12  ;;  %vm68_vm6 = vcmask 786112   ;;  %vm80_vm7 = vcmask 720512  }
   0x5   :  { %42 = vrot.lane.b32.xlu1 %v41_v5, %s263_s24  ;;  %v220_v8 = vld [vmem:[%s411_s0 + $0xc] ss:$16 sm:%s47_s23]   ;;  %v29_v10 = vsel %vm6_vm0, %v217_v7, %v216_v6  ;;  %s83_s3 = smov 3  ;;  %s86_s4 = smov 12  ;;  %vm92_vm8 = vcmask 654912   ;;  %vm104_vm9 = vcmask 589312  }
   0x6   :  { %v221_v9 = vld [vmem:[%s411_s0 + $0xc] ss:$16 sm:%s50_s27]   ;;  %s264_s5 = smov 112   ;;  %s95_s6 = smov 3  ;;  %v226_v12 = vld [vmem:[%s411_s0 + $0x9] ss:$16 sm:%s83_s3]  }
   0x7   :  { %v53_v11 = vsel %vm6_vm0, %v221_v9, %v220_v8  ;;  %s98_s7 = smov 12  ;;  %v227_v13 = vld [vmem:[%s411_s0 + $0x9] ss:$16 sm:%s86_s4]   ;;  %s59_s12 = smov 3  ;;  %v228_v16 = vld [vmem:[%s411_s0 + $0x8] ss:$16 sm:%s95_s6]  }
   0x8   :  { %s62_s13 = smov 12  ;;  %s265_s14 = smov 96   ;;  %v222_v14 = vld [vmem:[%s411_s0 + $0xb] ss:$16 sm:%s59_s12]   ;;  %v229_v17 = vld [vmem:[%s411_s0 + $0x8] ss:$16 sm:%s98_s7]   ;;  %v89_v19 = vsel %vm6_vm0, %v227_v13, %v226_v12 }
   0x9   :  { %v223_v15 = vld [vmem:[%s411_s0 + $0xb] ss:$16 sm:%s62_s13]   ;;  %s266_s23 = smov 88   ;;  %s71_s24 = smov 3  ;;  %v101_v20 = vsel %vm6_vm0, %v229_v17, %v228_v16  ;;  %vm116_vm10 = vcmask 523712   ;;  %vm128_vm11 = vcmask 458112  }
   0xa   :  { %v65_v18 = vsel %vm6_vm0, %v223_v15, %v222_v14  ;;  %s119_s25 = smov 3  ;;  %s74_s26 = smov 12  ;;  %v224_v21 = vld [vmem:[%s411_s0 + $0xa] ss:$16 sm:%s71_s24]   ;;  %vm140_vm12 = vcmask 392512   ;;  %vm152_vm13 = vcmask 326912  }
   0xb   :  { %66 = vrot.lane.b32.xlu2 %v65_v18, %s266_s23  ;;  %s122_s27 = smov 12  ;;  %v225_v22 = vld [vmem:[%s411_s0 + $0xa] ss:$16 sm:%s74_s26]   ;;  %s267_s3 = smov 72   ;;  %vm164_vm14 = vcmask 261312   ;;  %vm176_vm15 = vcmask 195712  }
   0xc   :  { %30 = vrot.lane.b32.xlu0 %v29_v10, %s264_s5  ;;  %v232_v23 = vld [vmem:[%s411_s0 + $0x6] ss:$16 sm:%s119_s25]   ;;  %s131_s6 = smov 3  ;;  %s134_s7 = smov 12  ;;  %v77_v25 = vsel %vm6_vm0, %v225_v22, %v224_v21 }
   0xd   :  { %54 = vrot.lane.b32.xlu1 %v53_v11, %s265_s14  ;;  %s268_s8 = smov 64   ;;  %v233_v24 = vld [vmem:[%s411_s0 + $0x6] ss:$16 sm:%s122_s27]   ;;  %s107_s15 = smov 3 }
   0xe   :  { %v234_v26 = vld [vmem:[%s411_s0 + $0x5] ss:$16 sm:%s131_s6]   ;;  %s110_s16 = smov 12  ;;  %v125_v28 = vsel %vm6_vm0, %v233_v24, %v232_v23  ;;  %s269_s17 = smov 80   ;;  %v230_v30 = vld [vmem:[%s411_s0 + $0x7] ss:$16 sm:%s107_s15]  }
   0xf   :  { %v235_v27 = vld [vmem:[%s411_s0 + $0x5] ss:$16 sm:%s134_s7]   ;;  %s155_s18 = smov 3  ;;  %s158_s19 = smov 12  ;;  %v231_v31 = vld [vmem:[%s411_s0 + $0x7] ss:$16 sm:%s110_s16]  }
  0x10   :  { %v137_v29 = vsel %vm6_vm0, %v235_v27, %v234_v26  ;;  %s270_s24 = smov 48   ;;  %v238_v32 = vld [vmem:[%s411_s0 + $0x3] ss:$16 sm:%s155_s18]   ;;  %s167_s27 = smov 3  ;;  %v113_v34 = vsel %vm6_vm0, %v231_v31, %v230_v30 }
  0x11   :  { %s170_s28 = smov 12  ;;  %s271_s29 = smov 40   ;;  %v239_v33 = vld [vmem:[%s411_s0 + $0x3] ss:$16 sm:%s158_s19]   ;;  %v240_v35 = vld [vmem:[%s411_s0 + $0x2] ss:$16 sm:%s167_s27]  }
  0x12   :  { %v241_v36 = vld [vmem:[%s411_s0 + $0x2] ss:$16 sm:%s170_s28]   ;;  %s143_s7 = smov 3  ;;  %v161_v37 = vsel %vm6_vm0, %v239_v33, %v238_v32  ;;  %s272_s9 = smov 56  }
  0x13   :  { %78 = vrot.lane.b32.xlu2 %v77_v25, %s269_s17  ;;  %v173_v38 = vsel %vm6_vm0, %v241_v36, %v240_v35  ;;  %v236_v39 = vld [vmem:[%s411_s0 + $0x4] ss:$16 sm:%s143_s7]   ;;  %s273_s14 = smov 24   ;;  %s274_s15 = smov 16  }
  0x14   :  { %90 = vrot.lane.b32.xlu0 %v89_v19, %s267_s3  ;;  %s179_s16 = smov 3  ;;  %s182_s17 = smov 12 }
  0x15   :  { %102 = vrot.lane.b32.xlu1 %v101_v20, %s268_s8  ;;  %s146_s8 = smov 12  ;;  %s275_s18 = smov 32   ;;  %v242_v42 = vld [vmem:[%s411_s0 + $0x1] ss:$16 sm:%s179_s16]  }
  0x16   :  { %v237_v40 = vld [vmem:[%s411_s0 + $0x4] ss:$16 sm:%s146_s8]   ;;  %v243_v43 = vld [vmem:[%s411_s0 + $0x1] ss:$16 sm:%s182_s17]   ;;  %s276_s23 = smov 8   ;;  %s4_s25 = smov 12 }
  0x17   :  { %v149_v41 = vsel %vm6_vm0, %v237_v40, %v236_v39  ;;  %v185_v44 = vsel %vm6_vm0, %v243_v43, %v242_v42  ;;  %v5_v46 = vld [vmem:[%s411_s0] ss:$16 sm:%s4_s25]  }
  0x1b   :  { %114 = vrot.lane.b32.xlu2 %v113_v34, %s272_s9 }
  0x1c   :  { %126 = vrot.lane.b32.xlu0 %v125_v28, %s270_s24  ;;  %s2_s24 = smov 3 }
  0x1d   :  { %138 = vrot.lane.b32.xlu1 %v137_v29, %s271_s29  ;;  %v3_v45 = vld [vmem:[%s411_s0] ss:$16 sm:%s2_s24]  }
  0x1e   :  { %v7_v47 = vsel %vm6_vm0, %v5_v46, %v3_v45  ;;  %vm188_vm0 = vcmask 130112  }
  0x1f   :  { %9 = vst.msk [vmem:[#allocation0] ss:$8 sm:$0xf] %vm8_vm1, %v7_v47  }
  0x23   :  { %150 = vrot.lane.b32.xlu2 %v149_v41, %s275_s18 }
  0x24   :  { %162 = vrot.lane.b32.xlu0 %v161_v37, %s273_s14 }
  0x25   :  { %174 = vrot.lane.b32.xlu1 %v173_v38, %s274_s15 }
  0x2b   :  { %186 = vrot.lane.b32.xlu2 %v185_v44, %s276_s23 }
  0x65   :  { %v67_v48 = vpop.permute.xlu2 %66  }
  0x6d   :  { %v79_v49 = vpop.permute.xlu2 %78  }
  0x75   :  { %v115_v52 = vpop.permute.xlu2 %114  }
  0x76   :  { %v19_v50 = vpop.permute.xlu0 %18  }
  0x77   :  { %21 = vst.msk [vmem:[#allocation0] ss:$8 sm:$0xf] %vm20_vm2, %v19_v50   ;;  %v43_v51 = vpop.permute.xlu1 %42  }
  0x7d   :  { %v151_v55 = vpop.permute.xlu2 %150  }
  0x7e   :  { %v31_v53 = vpop.permute.xlu0 %30  }
  0x7f   :  { %33 = vst.msk [vmem:[#allocation0] ss:$8 sm:$0xf] %vm32_vm3, %v31_v53   ;;  %v55_v54 = vpop.permute.xlu1 %54  }
  0x80   :  { %45 = vst.msk [vmem:[#allocation0] ss:$8 sm:$0xf] %vm44_vm4, %v43_v51  }
  0x81   :  { %57 = vst.msk [vmem:[#allocation0] ss:$8 sm:$0xf] %vm56_vm5, %v55_v54  }
  0x82   :  { %69 = vst.msk [vmem:[#allocation0] ss:$8 sm:$0xf] %vm68_vm6, %v67_v48  }
  0x83   :  { %81 = vst.msk [vmem:[#allocation0] ss:$8 sm:$0xf] %vm80_vm7, %v79_v49  }
  0x85   :  { %v187_v58 = vpop.permute.xlu2 %186  }
  0x86   :  { %v91_v56 = vpop.permute.xlu0 %90  }
  0x87   :  { %93 = vst.msk [vmem:[#allocation0] ss:$8 sm:$0xf] %vm92_vm8, %v91_v56   ;;  %v103_v57 = vpop.permute.xlu1 %102  }
  0x88   :  { %105 = vst.msk [vmem:[#allocation0] ss:$8 sm:$0xf] %vm104_vm9, %v103_v57  }
  0x89   :  { %117 = vst.msk [vmem:[#allocation0] ss:$8 sm:$0xf] %vm116_vm10, %v115_v52  }
  0x8e   :  { %v127_v59 = vpop.permute.xlu0 %126  }
  0x8f   :  { %129 = vst.msk [vmem:[#allocation0] ss:$8 sm:$0xf] %vm128_vm11, %v127_v59   ;;  %v139_v60 = vpop.permute.xlu1 %138  }
  0x90   :  { %141 = vst.msk [vmem:[#allocation0] ss:$8 sm:$0xf] %vm140_vm12, %v139_v60  }
  0x91   :  { %153 = vst.msk [vmem:[#allocation0] ss:$8 sm:$0xf] %vm152_vm13, %v151_v55  }
  0x96   :  { %v163_v61 = vpop.permute.xlu0 %162  }
  0x97   :  { %165 = vst.msk [vmem:[#allocation0] ss:$8 sm:$0xf] %vm164_vm14, %v163_v61   ;;  %v175_v62 = vpop.permute.xlu1 %174  }
  0x98   :  { %177 = vst.msk [vmem:[#allocation0] ss:$8 sm:$0xf] %vm176_vm15, %v175_v62  }
  0x99   :  { %189 = vst.msk [vmem:[#allocation0] ss:$8 sm:$0xf] %vm188_vm0, %v187_v58  }
  0xa0   :  { %v192_v63 = vld [vmem:[#allocation0] sm:$0x1]  ;;  %v197_v0 = vld [vmem:[#allocation0 + $0x8] sm:$0x1]  ;;  %v203_v1 = vld [vmem:[#allocation0 + $0x10] sm:$0x1] }
  0xa1   :  { %195 = vst [vmem:[%s412_s1] sm:$0x1] %v192_v63  ;;  %v209_v2 = vld [vmem:[#allocation0 + $0x18] sm:$0x1] }
  0xa2   :  { %244 = vst [vmem:[%s412_s1 + $0x1] sm:$0x1] %v197_v0 }
  0xa3   :  { %245 = vst [vmem:[%s412_s1 + $0x2] sm:$0x1] %v203_v1 }
  0xa4   :  { %246 = vst [vmem:[%s412_s1 + $0x3] sm:$0x1] %v209_v2 }

// kernel: sparse_encoder_forward.5
= control target key start
LH: loop header
LB: loop body
LE: loop exit
PB: predicated region body
PF: predicated region fallthrough
CT: control target
= control target key end

     0   :  { %s1603_s0 = inlined_call_operand.<no memory space> [shape: s32[1], index: 0, kind: input, shape index: {}]   ;;  %s1604_s1 = inlined_call_operand.vmem [shape: bf16[217,512], index: 1, kind: input, shape index: {}]   ;;  %s1605_s2 = inlined_call_operand.vmem [shape: bf16[16,217], index: 2, kind: input, shape index: {}]   ;;  %s1606_s3 = inlined_call_operand.vmem [shape: f32[1,512], index: 3, kind: input, shape index: {}]   ;;  %s1607_s4 = inlined_call_operand.vmem [shape: f32[16,1], index: 4, kind: input, shape index: {}]   ;;  %s1608_s5 = inlined_call_operand.vmem [shape: f32[16,1], index: 5, kind: input, shape index: {}]   ;;  %s1609_s6 = inlined_call_operand.vmem [shape: f32[16,512], index: 6, kind: output, shape index: {}]  }
   0x1   :  { %11 = sst [smem:[#allocation3]] %s1603_s0  ;;  %p733_p0 = scmp.le.s32.totalorder %s1603_s0, 0 }
   0x3   :  { %27 = sbr.rel (%p733_p0) target bundleno = 278 (0x116), region = 25 }
   0x8   :  { %v856_v0 = vld [vmem:[%s1604_s1 + $0xe0] sm:$0xf]  ;;  %v1003_v1 = vld [vmem:[%s1604_s1 + $0xec] sm:$0xf0]  ;;  %v1001_v2 = vld [vmem:[%s1604_s1 + $0xe4] sm:$0xf] }
   0x9   :  { %v857_v3 = vor.u32 %v1003_v1, %v856_v0  ;;  %v858_v4 = vld [vmem:[%s1604_s1 + $0xf0] sm:$0xf0]  ;;  %v952_v5 = vld [vmem:[%s1604_s1 + $0x1a0] sm:$0xf]  ;;  %v1027_v6 = vld [vmem:[%s1604_s1 + $0x1ac] sm:$0x10] }
   0xa   :  { %v861_v7 = vor.u32 %v1001_v2, %v858_v4  ;;  %v953_v8 = vor.u32 %v1027_v6, %v952_v5  ;;  %vm375_vm0 = vcmask 1043456   ;;  %vm376_vm1 = vcmask 1044480   ;;  %v1025_v9 = vld [vmem:[%s1604_s1 + $0x1a4] sm:$0xf]  ;;  %v954_v10 = vld [vmem:[%s1604_s1 + $0x1b0] sm:$0x10] }
   0xb   :  { %391 = vmatpush.bf16.msra.mxu0 %v857_v3  ;;  %v957_v11 = vor.u32 %v1025_v9, %v954_v10  ;;  %v840_v12 = vld [vmem:[%s1604_s1 + $0xc0] sm:$0xf]  ;;  %v999_v13 = vld [vmem:[%s1604_s1 + $0xcc] sm:$0xf0]  ;;  %v1045_v14 = vmov 65535   ;;  %vm371_vm2 = vcmask 728064  }
   0xc   :  { %419 = vmatpush.bf16.msra.mxu2 %v861_v7  ;;  %v377_v15 = vsel %vm375_vm0, 4294967295, %v1045_v14  ;;  %v841_v16 = vor.u32 %v999_v13, %v840_v12  ;;  %v997_v17 = vld [vmem:[%s1604_s1 + $0xc4] sm:$0xf]  ;;  %v842_v18 = vld [vmem:[%s1604_s1 + $0xd0] sm:$0xf0] }
   0xd   :  { %v1126_v19 = vsel %vm376_vm1, %v377_v15, 0  ;;  %v845_v20 = vor.u32 %v997_v17, %v842_v18  ;;  %v936_v21 = vld [vmem:[%s1604_s1 + $0x180] sm:$0xf]  ;;  %v1023_v22 = vld [vmem:[%s1604_s1 + $0x18c] sm:$0xf0] }
   0xe   :  { %v380_v23 = vand.u32 %v953_v8, %v1126_v19  ;;  %v383_v24 = vand.u32 %v957_v11, %v1126_v19  ;;  %v1021_v25 = vld [vmem:[%s1604_s1 + $0x184] sm:$0xf]  ;;  %v938_v26 = vld [vmem:[%s1604_s1 + $0x190] sm:$0xf0]  ;;  %v824_v27 = vld [vmem:[%s1604_s1 + $0xa0] sm:$0xf]  ;;  %v937_v31 = vor.u32 %v1023_v22, %v936_v21 }
   0xf   :  { %392 = vmatpush.bf16.msra.mxu0 %v841_v16  ;;  %v995_v28 = vld [vmem:[%s1604_s1 + $0xac] sm:$0xf0]  ;;  %v993_v29 = vld [vmem:[%s1604_s1 + $0xa4] sm:$0xf]  ;;  %v826_v30 = vld [vmem:[%s1604_s1 + $0xb0] sm:$0xf0]  ;;  %v941_v32 = vor.u32 %v1021_v25, %v938_v26 }
  0x10   :  { %407 = vmatpush.bf16.msra.mxu1 %v380_v23  ;;  %435 = vmatpush.bf16.msra.mxu3 %v383_v24  ;;  %v825_v33 = vor.u32 %v995_v28, %v824_v27  ;;  %v920_v34 = vld [vmem:[%s1604_s1 + $0x160] sm:$0xf]  ;;  %v1019_v35 = vld [vmem:[%s1604_s1 + $0x16c] sm:$0xf0]  ;;  %v1017_v36 = vld [vmem:[%s1604_s1 + $0x164] sm:$0xf]  ;;  %v829_v37 = vor.u32 %v993_v29, %v826_v30 }
  0x11   :  { %420 = vmatpush.bf16.msra.mxu2 %v845_v20  ;;  %v922_v38 = vld [vmem:[%s1604_s1 + $0x170] sm:$0xf0]  ;;  %v808_v39 = vld [vmem:[%s1604_s1 + $0x80] sm:$0xf]  ;;  %v991_v40 = vld [vmem:[%s1604_s1 + $0x8c] sm:$0xf0]  ;;  %v921_v44 = vor.u32 %v1019_v35, %v920_v34 }
  0x12   :  { %v989_v41 = vld [vmem:[%s1604_s1 + $0x84] sm:$0xf]  ;;  %v810_v42 = vld [vmem:[%s1604_s1 + $0x90] sm:$0xf0]  ;;  %v809_v43 = vor.u32 %v991_v40, %v808_v39  ;;  %v925_v45 = vor.u32 %v1017_v36, %v922_v38  ;;  %v904_v46 = vld [vmem:[%s1604_s1 + $0x140] sm:$0xf] }
  0x13   :  { %393 = vmatpush.bf16.msra.mxu0 %v825_v33  ;;  %v792_v47 = vld [vmem:[%s1604_s1 + $0x60] sm:$0xf]  ;;  %v987_v48 = vld [vmem:[%s1604_s1 + $0x6c] sm:$0xf0]  ;;  %v813_v49 = vor.u32 %v989_v41, %v810_v42  ;;  %v1013_v51 = vld [vmem:[%s1604_s1 + $0x144] sm:$0xf] }
  0x14   :  { %408 = vmatpush.bf16.msra.mxu1 %v937_v31  ;;  %436 = vmatpush.bf16.msra.mxu3 %v941_v32  ;;  %v1015_v50 = vld [vmem:[%s1604_s1 + $0x14c] sm:$0xf0]  ;;  %v906_v52 = vld [vmem:[%s1604_s1 + $0x150] sm:$0xf0]  ;;  %v985_v53 = vld [vmem:[%s1604_s1 + $0x64] sm:$0xf]  ;;  %v793_v55 = vor.u32 %v987_v48, %v792_v47 }
  0x15   :  { %421 = vmatpush.bf16.msra.mxu2 %v829_v37  ;;  %v794_v54 = vld [vmem:[%s1604_s1 + $0x70] sm:$0xf0]  ;;  %v888_v56 = vld [vmem:[%s1604_s1 + $0x120] sm:$0xf]  ;;  %v905_v57 = vor.u32 %v1015_v50, %v904_v46  ;;  %v909_v58 = vor.u32 %v1013_v51, %v906_v52  ;;  %v1011_v59 = vld [vmem:[%s1604_s1 + $0x12c] sm:$0xf0] }
  0x16   :  { %v776_v60 = vld [vmem:[%s1604_s1 + $0x40] sm:$0xf]  ;;  %v983_v61 = vld [vmem:[%s1604_s1 + $0x4c] sm:$0xf0]  ;;  %v797_v62 = vor.u32 %v985_v53, %v794_v54  ;;  %v1009_v63 = vld [vmem:[%s1604_s1 + $0x124] sm:$0xf]  ;;  %v889_v7 = vor.u32 %v1011_v59, %v888_v56 }
  0x17   :  { %394 = vmatpush.bf16.msra.mxu0 %v809_v43  ;;  %v890_v0 = vld [vmem:[%s1604_s1 + $0x130] sm:$0xf0]  ;;  %v981_v1 = vld [vmem:[%s1604_s1 + $0x44] sm:$0xf]  ;;  %v960_v3 = vld [vmem:[%s1604_s1 + $0x1a8] sm:$0xf]  ;;  %v777_v5 = vor.u32 %v983_v61, %v776_v60 }
  0x18   :  { %409 = vmatpush.bf16.msra.mxu1 %v921_v44  ;;  %437 = vmatpush.bf16.msra.mxu3 %v925_v45  ;;  %v778_v2 = vld [vmem:[%s1604_s1 + $0x50] sm:$0xf0]  ;;  %v1028_v4 = vld [vmem:[%s1604_s1 + $0x1b4] sm:$0x10]  ;;  %v872_v6 = vld [vmem:[%s1604_s1 + $0x100] sm:$0xf]  ;;  %v893_v8 = vor.u32 %v1009_v63, %v890_v0 }
  0x19   :  { %422 = vmatpush.bf16.msra.mxu2 %v813_v49  ;;  %v1007_v9 = vld [vmem:[%s1604_s1 + $0x10c] sm:$0xf0]  ;;  %v760_v10 = vld [vmem:[%s1604_s1 + $0x20] sm:$0xf]  ;;  %v781_v12 = vor.u32 %v981_v1, %v778_v2  ;;  %v1005_v13 = vld [vmem:[%s1604_s1 + $0x104] sm:$0xf]  ;;  %v961_v16 = vor.u32 %v1028_v4, %v960_v3 }
  0x1a   :  { %v979_v11 = vld [vmem:[%s1604_s1 + $0x2c] sm:$0xf0]  ;;  %v874_v14 = vld [vmem:[%s1604_s1 + $0x110] sm:$0xf0]  ;;  %v864_v15 = vld [vmem:[%s1604_s1 + $0xe8] sm:$0xf]  ;;  %v873_v25 = vor.u32 %v1007_v9, %v872_v6 }
  0x1b   :  { %395 = vmatpush.bf16.msra.mxu0 %v793_v55  ;;  %v1004_v17 = vld [vmem:[%s1604_s1 + $0xf4] sm:$0xf0]  ;;  %v977_v18 = vld [vmem:[%s1604_s1 + $0x24] sm:$0xf]  ;;  %v762_v20 = vld [vmem:[%s1604_s1 + $0x30] sm:$0xf0]  ;;  %v761_v21 = vor.u32 %v979_v11, %v760_v10  ;;  %v877_v26 = vor.u32 %v1005_v13, %v874_v14  ;;  %v386_v32 = vand.u32 %v961_v16, %v1126_v19 }
  0x1c   :  { %410 = vmatpush.bf16.msra.mxu1 %v905_v57  ;;  %438 = vmatpush.bf16.msra.mxu3 %v909_v58  ;;  %v744_v22 = vld [vmem:[%s1604_s1] sm:$0xf]  ;;  %v975_v23 = vld [vmem:[%s1604_s1 + $0xc] sm:$0xf0]  ;;  %v1026_v24 = vld [vmem:[%s1604_s1 + $0x1ac] sm:$0xf]  ;;  %v865_v31 = vor.u32 %v1004_v17, %v864_v15  ;;  %v765_v36 = vor.u32 %v977_v18, %v762_v20 }
  0x1d   :  { %423 = vmatpush.bf16.msra.mxu2 %v797_v62  ;;  %v848_v27 = vld [vmem:[%s1604_s1 + $0xc8] sm:$0xf]  ;;  %v962_v28 = vld [vmem:[%s1604_s1 + $0x1b8] sm:$0x10]  ;;  %v971_v29 = vld [vmem:[%s1605_s2 + $0x4] sm:$0xf]  ;;  %v745_v40 = vor.u32 %v975_v23, %v744_v22 }
  0x1e   :  { %v738_v30 = vld [vmem:[%s1605_s2 + $0x8] sm:$0xf0]  ;;  %v1000_v33 = vld [vmem:[%s1604_s1 + $0xd4] sm:$0xf0]  ;;  %v866_v35 = vld [vmem:[%s1604_s1 + $0xf8] sm:$0xf0]  ;;  %v965_v42 = vor.u32 %v1026_v24, %v962_v28 }
  0x1f   :  { %396 = vmatpush.bf16.msra.mxu0 %v777_v5  ;;  %v1002_v34 = vld [vmem:[%s1604_s1 + $0xec] sm:$0xf]  ;;  %v944_v37 = vld [vmem:[%s1604_s1 + $0x188] sm:$0xf]  ;;  %v1024_v38 = vld [vmem:[%s1604_s1 + $0x194] sm:$0xf0]  ;;  %v1305_v43 = vor.u32 %v971_v29, %v738_v30  ;;  %v849_v47 = vor.u32 %v1000_v33, %v848_v27 }
  0x20   :  { %411 = vmatpush.bf16.msra.mxu1 %v889_v7  ;;  %439 = vmatpush.bf16.msra.mxu3 %v893_v8  ;;  %v973_v39 = vld [vmem:[%s1604_s1 + $0x4] sm:$0xf]  ;;  %v746_v41 = vld [vmem:[%s1604_s1 + $0x10] sm:$0xf0]  ;;  %v736_v44 = vld [vmem:[%s1605_s2] sm:$0xf]  ;;  %v869_v46 = vor.u32 %v1002_v34, %v866_v35  ;;  %v945_v48 = vor.u32 %v1024_v38, %v944_v37  ;;  %v389_v55 = vand.u32 %v965_v42, %v1126_v19 }
  0x21   :  { %424 = vmatpush.bf16.msra.mxu2 %v781_v12  ;;  %v972_v45 = vld [vmem:[%s1605_s2 + $0x4] sm:$0xf0]  ;;  %v998_v49 = vld [vmem:[%s1604_s1 + $0xcc] sm:$0xf]  ;;  %v850_v50 = vld [vmem:[%s1604_s1 + $0xd8] sm:$0xf0]  ;;  %v749_v51 = vor.u32 %v973_v39, %v746_v41 }
  0x22   :  { %v1319_v52 = vor.u32 %v972_v45, %v736_v44  ;;  %v832_v53 = vld [vmem:[%s1604_s1 + $0xa8] sm:$0xf]  ;;  %v996_v54 = vld [vmem:[%s1604_s1 + $0xb4] sm:$0xf0]  ;;  %v853_v58 = vor.u32 %v998_v49, %v850_v50  ;;  %v1022_v19 = vld [vmem:[%s1604_s1 + $0x18c] sm:$0xf] }
  0x23   :  { %397 = vmatpush.bf16.msra.mxu0 %v761_v21  ;;  %v928_v56 = vld [vmem:[%s1604_s1 + $0x168] sm:$0xf]  ;;  %v1020_v57 = vld [vmem:[%s1604_s1 + $0x174] sm:$0xf0]  ;;  %v946_v59 = vld [vmem:[%s1604_s1 + $0x198] sm:$0xf0]  ;;  %v833_v60 = vor.u32 %v996_v54, %v832_v53 }
  0x24   :  { %412 = vmatpush.bf16.msra.mxu1 %v873_v25  ;;  %440 = vmatpush.bf16.msra.mxu3 %v877_v26  ;;  %v994_v61 = vld [vmem:[%s1604_s1 + $0xac] sm:$0xf]  ;;  %v834_v62 = vld [vmem:[%s1604_s1 + $0xb8] sm:$0xf0]  ;;  %v929_v63 = vor.u32 %v1020_v57, %v928_v56  ;;  %v816_v0 = vld [vmem:[%s1604_s1 + $0x88] sm:$0xf]  ;;  %v949_v2 = vor.u32 %v1022_v19, %v946_v59 }
  0x25   :  { %425 = vmatpush.bf16.msra.mxu2 %v765_v36  ;;  %v992_v1 = vld [vmem:[%s1604_s1 + $0x94] sm:$0xf0]  ;;  %v912_v3 = vld [vmem:[%s1604_s1 + $0x148] sm:$0xf]  ;;  %v837_v5 = vor.u32 %v994_v61, %v834_v62  ;;  %v1018_v6 = vld [vmem:[%s1604_s1 + $0x16c] sm:$0xf] }
  0x26   :  { %v1016_v4 = vld [vmem:[%s1604_s1 + $0x154] sm:$0xf0]  ;;  %v930_v7 = vld [vmem:[%s1604_s1 + $0x178] sm:$0xf0]  ;;  %v817_v8 = vor.u32 %v992_v1, %v816_v0  ;;  %v990_v9 = vld [vmem:[%s1604_s1 + $0x8c] sm:$0xf] }
  0x27   :  { %398 = vmatpush.bf16.msra.mxu0 %v745_v40  ;;  %967 = vmatmul.msk.bf16.vlgmr.msra.gmra.mxu3 %vm371_vm2, %v1305_v43  ;;  %v818_v10 = vld [vmem:[%s1604_s1 + $0x98] sm:$0xf0]  ;;  %v913_v11 = vor.u32 %v1016_v4, %v912_v3  ;;  %v800_v12 = vld [vmem:[%s1604_s1 + $0x68] sm:$0xf]  ;;  %v988_v13 = vld [vmem:[%s1604_s1 + $0x74] sm:$0xf0]  ;;  %v933_v14 = vor.u32 %v1018_v6, %v930_v7 }
  0x28   :  { %447 = vmatpush.bf16.msrb.mxu1 %v865_v31  ;;  %463 = vmatpush.bf16.msrb.mxu3 %v386_v32  ;;  %v896_v15 = vld [vmem:[%s1604_s1 + $0x128] sm:$0xf]  ;;  %v1012_v16 = vld [vmem:[%s1604_s1 + $0x134] sm:$0xf0]  ;;  %v821_v17 = vor.u32 %v990_v9, %v818_v10  ;;  %v1014_v18 = vld [vmem:[%s1604_s1 + $0x14c] sm:$0xf]  ;;  %v801_v22 = vor.u32 %v988_v13, %v800_v12 }
  0x29   :  { %966 = vmatmul.msk.bf16.vlgmr.msra.gmra.mxu1 %vm371_vm2, %v1305_v43  ;;  %426 = vmatpush.bf16.msra.mxu2 %v749_v51  ;;  %v914_v20 = vld [vmem:[%s1604_s1 + $0x158] sm:$0xf0]  ;;  %v642_v21 = vld [vmem:[%s1607_s4] sm:$0xff]  ;;  %v986_v23 = vld [vmem:[%s1604_s1 + $0x6c] sm:$0xf]  ;;  %v1046_v25 = vmov 0   ;;  %v897_v27 = vor.u32 %v1012_v16, %v896_v15 }
  0x2a   :  { %399 = vmatmul.bf16.vlgmr.msra.gmra.mxu0 %v1319_v52  ;;  %v802_v24 = vld [vmem:[%s1604_s1 + $0x78] sm:$0xf0]  ;;  %1033 = vset.pattern.permute.xlu0 %v1046_v25  ;;  %v662_v26 = vld [vmem:[%s1608_s5] sm:$0xff]  ;;  %v784_v28 = vld [vmem:[%s1604_s1 + $0x48] sm:$0xf]  ;;  %v917_v30 = vor.u32 %v1014_v18, %v914_v20 }
  0x2b   :  { %475 = vmatpush.bf16.msrb.mxu0 %v869_v46  ;;  %v984_v29 = vld [vmem:[%s1604_s1 + $0x54] sm:$0xf0]  ;;  %646 = vperm.xlu0 %1033, %v642_v21   ;;  %v880_v31 = vld [vmem:[%s1604_s1 + $0x108] sm:$0xf]  ;;  %v805_v33 = vor.u32 %v986_v23, %v802_v24  ;;  %v1010_v34 = vld [vmem:[%s1604_s1 + $0x12c] sm:$0xf] }
  0x2c   :  { %448 = vmatpush.bf16.msrb.mxu1 %v849_v47  ;;  %464 = vmatpush.bf16.msrb.mxu3 %v945_v48  ;;  %v1008_v32 = vld [vmem:[%s1604_s1 + $0x114] sm:$0xf0]  ;;  %v898_v35 = vld [vmem:[%s1604_s1 + $0x138] sm:$0xf0]  ;;  %v785_v36 = vor.u32 %v984_v29, %v784_v28  ;;  %v982_v37 = vld [vmem:[%s1604_s1 + $0x4c] sm:$0xf] }
  0x2d   :  { %491 = vmatpush.bf16.msrb.mxu2 %v389_v55  ;;  %1034 = vset.pattern.permute.xlu1 %v1046_v25  ;;  %v786_v38 = vld [vmem:[%s1604_s1 + $0x58] sm:$0xf0]  ;;  %v881_v39 = vor.u32 %v1008_v32, %v880_v31  ;;  %v768_v40 = vld [vmem:[%s1604_s1 + $0x28] sm:$0xf]  ;;  %v980_v41 = vld [vmem:[%s1604_s1 + $0x34] sm:$0xf0]  ;;  %v901_v42 = vor.u32 %v1010_v34, %v898_v35 }
  0x2e   :  { %427 = vmatmul.bf16.vlgmr.msra.gmra.mxu2 %v1319_v52  ;;  %666 = vperm.xlu1 %1034, %v662_v26   ;;  %v643_v44 = vld [vmem:[%s1607_s4 + $0x8] sm:$0xff]  ;;  %v789_v45 = vor.u32 %v982_v37, %v786_v38  ;;  %v882_v47 = vld [vmem:[%s1604_s1 + $0x118] sm:$0xf0]  ;;  %v769_v48 = vor.u32 %v980_v41, %v768_v40  ;;  %v976_v54 = vld [vmem:[%s1604_s1 + $0x14] sm:$0xf0] }
  0x2f   :  { %476 = vmatpush.bf16.msrb.mxu0 %v853_v58  ;;  %v1006_v46 = vld [vmem:[%s1604_s1 + $0x10c] sm:$0xf]  ;;  %v770_v50 = vld [vmem:[%s1604_s1 + $0x38] sm:$0xf0]  ;;  %v752_v53 = vld [vmem:[%s1604_s1 + $0x8] sm:$0xf] }
  0x30   :  { %449 = vmatpush.bf16.msrb.mxu1 %v833_v60  ;;  %465 = vmatpush.bf16.msrb.mxu3 %v929_v63  ;;  %v978_v49 = vld [vmem:[%s1604_s1 + $0x2c] sm:$0xf]  ;;  %v885_v55 = vor.u32 %v1006_v46, %v882_v47  ;;  %v753_v57 = vor.u32 %v976_v54, %v752_v53  ;;  %v754_v19 = vld [vmem:[%s1604_s1 + $0x18] sm:$0xf0]  ;;  %v1047_v60 = vmov 16.0  }
  0x31   :  { %492 = vmatpush.bf16.msrb.mxu2 %v949_v2  ;;  %v663_v51 = vld [vmem:[%s1608_s5 + $0x8] sm:$0xff]  ;;  %v773_v56 = vor.u32 %v978_v49, %v770_v50  ;;  %1035 = vrcp.f32 %v1047_v60 }
  0x32   :  { %v974_v58 = vld [vmem:[%s1604_s1 + $0xc] sm:$0xf] }
  0x33   :  { %477 = vmatpush.bf16.msrb.mxu0 %v837_v5  ;;  %651 = vperm.xlu0 %1033, %v643_v44   ;;  %v757_v59 = vor.u32 %v974_v58, %v754_v19 }
  0x34   :  { %450 = vmatpush.bf16.msrb.mxu1 %v817_v8  ;;  %466 = vmatpush.bf16.msrb.mxu3 %v913_v11 }
  0x35   :  { %493 = vmatpush.bf16.msrb.mxu2 %v933_v14 }
  0x36   :  { %671 = vperm.xlu1 %1034, %v663_v51  }
  0x37   :  { %478 = vmatpush.bf16.msrb.mxu0 %v821_v17  ;;  %v1036_v63 = vpop.eup %1035 }
  0x38   :  { %451 = vmatpush.bf16.msrb.mxu1 %v801_v22  ;;  %467 = vmatpush.bf16.msrb.mxu3 %v897_v27  ;;  %v532_v2 = vmul.f32 16.0, %v1036_v63  ;;  %vm536_vm3 = vweird.f32 %v1036_v63 }
  0x39   :  { %494 = vmatpush.bf16.msrb.mxu2 %v917_v30 }
  0x3a   :  { %v533_v7 = vsub.f32 1.0, %v532_v2 }
  0x3b   :  { %479 = vmatpush.bf16.msrb.mxu0 %v805_v33 }
  0x3c   :  { %452 = vmatpush.bf16.msrb.mxu1 %v785_v36  ;;  %468 = vmatpush.bf16.msrb.mxu3 %v881_v39  ;;  %v534_v9 = vmul.f32 %v1036_v63, %v533_v7 }
  0x3d   :  { %495 = vmatpush.bf16.msrb.mxu2 %v901_v42 }
  0x3e   :  { %v535_v14 = vadd.f32 %v1036_v63, %v534_v9 }
  0x3f   :  { %480 = vmatpush.bf16.msrb.mxu0 %v789_v45  ;;  %968 = vmatmul.msk.bf16.vlgmr.msrb.gmra.mxu3 %vm371_vm2, %v1305_v43 }
  0x40   :  { %453 = vmatpush.bf16.msrb.mxu1 %v769_v48  ;;  %v1472_v20 = vsel %vm536_vm3, %v1036_v63, %v535_v14 }
  0x41   :  { %496 = vmatpush.bf16.msrb.mxu2 %v885_v55 }
  0x43   :  { %481 = vmatpush.bf16.msrb.mxu0 %v773_v56 }
  0x44   :  { %454 = vmatpush.bf16.msrb.mxu1 %v753_v57  ;;  %969 = vmatmul.msk.bf16.vlgmr.msrb.gmra.mxu2 %vm371_vm2, %v1305_v43 }
  0x47   :  { %455 = vmatmul.bf16.vlgmr.msrb.gmra.mxu1 %v1319_v52  ;;  %482 = vmatpush.bf16.msrb.mxu0 %v757_v59 }
  0x4a   :  { %483 = vmatmul.bf16.vlgmr.msrb.gmra.mxu0 %v1319_v52 }
  0xa6   :  { %v414_v61 = vpop.f32.mrf.mxu1 }
  0xa7   :  { %v400_v62 = vpop.f32.mrf.mxu0 }
  0xa8   :  { %v415_v3 = vadd.f32 %v414_v61, %v400_v62 }
  0xaa   :  { %v442_v0 = vpop.f32.mrf.mxu3 }
  0xae   :  { %v416_v1 = vpop.f32.mrf.mxu1 }
  0xaf   :  { %v402_v4 = vpop.f32.mrf.mxu0 }
  0xb0   :  { %v417_v6 = vadd.f32 %v416_v1, %v402_v4 }
  0xb1   :  { %v428_v5 = vpop.f32.mrf.mxu2 }
  0xb2   :  { %v503_v8 = vadd.f32 %v417_v6, %v415_v3  ;;  %v444_v11 = vpop.f32.mrf.mxu3  ;;  %v443_v12 = vadd.f32 %v442_v0, %v428_v5 }
  0xb4   :  { %v504_v43 = vrot.slane %v503_v8, 4 }
  0xb6   :  { %v505_v10 = vadd.f32 %v504_v43, %v503_v8 }
  0xb8   :  { %v506_v52 = vrot.slane %v505_v10, 2 }
  0xb9   :  { %v430_v13 = vpop.f32.mrf.mxu2 }
  0xba   :  { %v445_v15 = vadd.f32 %v444_v11, %v430_v13  ;;  %v507_v16 = vadd.f32 %v506_v52, %v505_v10 }
  0xbc   :  { %v510_v17 = vadd.f32 %v445_v15, %v443_v12  ;;  %v508_v18 = vrot.slane %v507_v16, 1 }
  0xbe   :  { %v511_v21 = vrot.slane %v510_v17, 4  ;;  %v509_v22 = vadd.f32 %v508_v18, %v507_v16 }
  0xc0   :  { %v512_v23 = vadd.f32 %v511_v21, %v510_v17  ;;  %v538_v24 = vmul.f32 %v1472_v20, %v509_v22 }
  0xc2   :  { %v470_v25 = vpop.f32.mrf.mxu3  ;;  %v513_v26 = vrot.slane %v512_v23, 2  ;;  %v1475_v28 = vsub.f32 %v415_v3, %v538_v24  ;;  %v1477_v29 = vsub.f32 %v417_v6, %v538_v24 }
  0xc4   :  { %v456_v27 = vpop.f32.mrf.mxu1  ;;  %v514_v30 = vadd.f32 %v513_v26, %v512_v23  ;;  %v550_v31 = vmul.f32 %v1475_v28, %v1475_v28  ;;  %v554_v32 = vmul.f32 %v1477_v29, %v1477_v29 }
  0xc5   :  { %v471_v44 = vadd.f32 %v470_v25, %v456_v27  ;;  %v1504_v27 = vpop.permute.xlu0 %646 }
  0xc6   :  { %v515_v34 = vrot.slane %v514_v30, 1  ;;  %v558_v36 = vadd.f32 %v554_v32, %v550_v31 }
  0xc7   :  { %v484_v33 = vpop.f32.mrf.mxu0  ;;  %v498_v35 = vpop.f32.mrf.mxu2 }
  0xc8   :  { %v516_v37 = vadd.f32 %v515_v34, %v514_v30  ;;  %v559_v38 = vrot.slane %v558_v36, 4  ;;  %v499_v56 = vadd.f32 %v498_v35, %v484_v33  ;;  %v1510_v34 = vpop.permute.xlu1 %666 }
  0xca   :  { %v539_v39 = vmul.f32 %v1472_v20, %v516_v37  ;;  %v472_v40 = vpop.f32.mrf.mxu3  ;;  %v560_v42 = vadd.f32 %v559_v38, %v558_v36 }
  0xcc   :  { %v458_v41 = vpop.f32.mrf.mxu1  ;;  %v1484_v46 = vsub.f32 %v443_v12, %v539_v39  ;;  %v1486_v47 = vsub.f32 %v445_v15, %v539_v39  ;;  %v561_v48 = vrot.slane %v560_v42, 2 }
  0xcd   :  { %v473_v45 = vadd.f32 %v472_v40, %v458_v41 }
  0xce   :  { %v551_v51 = vmul.f32 %v1484_v46, %v1484_v46  ;;  %v555_v53 = vmul.f32 %v1486_v47, %v1486_v47  ;;  %v562_v55 = vadd.f32 %v561_v48, %v560_v42 }
  0xcf   :  { %v517_v49 = vadd.f32 %v473_v45, %v471_v44  ;;  %v486_v50 = vpop.f32.mrf.mxu0  ;;  %v500_v54 = vpop.f32.mrf.mxu2 }
  0xd0   :  { %v501_v58 = vadd.f32 %v500_v54, %v486_v50  ;;  %v565_v19 = vadd.f32 %v555_v53, %v551_v51  ;;  %v563_v59 = vrot.slane %v562_v55, 1  ;;  %v1516_v54 = vpop.permute.xlu0 %651 }
  0xd1   :  { %v518_v57 = vrot.slane %v517_v49, 4 }
  0xd2   :  { %v524_v61 = vadd.f32 %v501_v58, %v499_v56  ;;  %v566_v62 = vrot.slane %v565_v19, 4  ;;  %v564_v63 = vadd.f32 %v563_v59, %v562_v55 }
  0xd3   :  { %v519_v60 = vadd.f32 %v518_v57, %v517_v49 }
  0xd4   :  { %v525_v1 = vrot.slane %v524_v61, 4  ;;  %v567_v2 = vadd.f32 %v566_v62, %v565_v19  ;;  %v586_v3 = vmul.f32 %v564_v63, %v1472_v20  ;;  %v1523_v19 = vld [vmem:[%s1606_s3] sm:$0xf] }
  0xd5   :  { %v520_v0 = vrot.slane %v519_v60, 2 }
  0xd6   :  { %v526_v5 = vadd.f32 %v525_v1, %v524_v61  ;;  %v568_v6 = vrot.slane %v567_v2, 2  ;;  %v590_v7 = vadd.f32 1e-06, %v586_v3 }
  0xd7   :  { %v521_v4 = vadd.f32 %v520_v0, %v519_v60  ;;  %v1525_v60 = vpop.permute.xlu1 %671 }
  0xd8   :  { %v527_v43 = vrot.slane %v526_v5, 2  ;;  %v569_v9 = vadd.f32 %v568_v6, %v567_v2  ;;  %1037 = vrsqrt.f32 %v590_v7  ;;  %vm600_vm5 = vweird.f32 %v590_v7 }
  0xd9   :  { %v522_v8 = vrot.slane %v521_v4, 1 }
  0xda   :  { %v528_v11 = vadd.f32 %v527_v43, %v526_v5  ;;  %v570_v12 = vrot.slane %v569_v9, 1 }
  0xdb   :  { %v523_v10 = vadd.f32 %v522_v8, %v521_v4 }
  0xdc   :  { %v529_v13 = vrot.slane %v528_v11, 1  ;;  %v571_v14 = vadd.f32 %v570_v12, %v569_v9 }
  0xdd   :  { %v540_v52 = vmul.f32 %v1472_v20, %v523_v10 }
  0xde   :  { %v530_v17 = vadd.f32 %v529_v13, %v528_v11  ;;  %v587_v18 = vmul.f32 %v571_v14, %v1472_v20  ;;  %v1038_v21 = vpop.eup %1037 }
  0xdf   :  { %v1494_v15 = vsub.f32 %v471_v44, %v540_v52  ;;  %v1496_v16 = vsub.f32 %v473_v45, %v540_v52  ;;  %v595_v25 = vmul.f32 %v1038_v21, %v590_v7  ;;  %vm601_vm4 = vweird.f32 %v1038_v21 }
  0xe0   :  { %v541_v24 = vmul.f32 %v1472_v20, %v530_v17  ;;  %v591_v26 = vadd.f32 1e-06, %v587_v18  ;;  %vm602_vm6 = vmor %vm600_vm5, %vm601_vm4 }
  0xe1   :  { %v552_v22 = vmul.f32 %v1494_v15, %v1494_v15  ;;  %v556_v23 = vmul.f32 %v1496_v16, %v1496_v16  ;;  %v596_v33 = vmul.f32 %v1038_v21, %v595_v25 }
  0xe2   :  { %v1506_v31 = vsub.f32 %v499_v56, %v541_v24  ;;  %v1508_v32 = vsub.f32 %v501_v58, %v541_v24  ;;  %1039 = vrsqrt.f32 %v591_v26  ;;  %vm610_vm8 = vweird.f32 %v591_v26 }
  0xe3   :  { %v572_v30 = vadd.f32 %v556_v23, %v552_v22  ;;  %v597_v38 = vmul.f32 0.5, %v596_v33 }
  0xe4   :  { %v553_v36 = vmul.f32 %v1506_v31, %v1506_v31  ;;  %v557_v37 = vmul.f32 %v1508_v32, %v1508_v32 }
  0xe5   :  { %v573_v35 = vrot.slane %v572_v30, 4  ;;  %v598_v41 = vsub.f32 1.5, %v597_v38 }
  0xe6   :  { %v579_v40 = vadd.f32 %v557_v37, %v553_v36 }
  0xe7   :  { %v574_v39 = vadd.f32 %v573_v35, %v572_v30  ;;  %v599_v48 = vmul.f32 %v1038_v21, %v598_v41 }
  0xe8   :  { %v580_v44 = vrot.slane %v579_v40, 4  ;;  %v1040_v45 = vpop.eup %1039 }
  0xe9   :  { %v575_v42 = vrot.slane %v574_v39, 2  ;;  %v605_v49 = vmul.f32 %v1040_v45, %v591_v26  ;;  %v603_v53 = vsel %vm602_vm6, %v1038_v21, %v599_v48  ;;  %vm611_vm7 = vweird.f32 %v1040_v45 }
  0xea   :  { %v581_v51 = vadd.f32 %v580_v44, %v579_v40  ;;  %v634_v55 = vmul.f32 %v603_v53, %v1475_v28  ;;  %v638_v56 = vmul.f32 %v603_v53, %v1477_v29  ;;  %v692_v29 = vperm.slane %v1523_v19, 0  ;;  %vm612_vm9 = vmor %vm610_vm8, %vm611_vm7 }
  0xeb   :  { %v576_v50 = vadd.f32 %v575_v42, %v574_v39  ;;  %v606_v57 = vmul.f32 %v1040_v45, %v605_v49 }
  0xec   :  { %v582_v59 = vrot.slane %v581_v51, 2  ;;  %v654_v63 = vmul.f32 %v1504_v27, %v634_v55  ;;  %v658_v0 = vmul.f32 %v1516_v54, %v638_v56  ;;  %v694_v56 = vperm.slane %v1523_v19, 2 }
  0xed   :  { %v577_v58 = vrot.slane %v576_v50, 1  ;;  %v607_v61 = vmul.f32 0.5, %v606_v57 }
  0xee   :  { %v583_v28 = vadd.f32 %v582_v59, %v581_v51  ;;  %v674_v3 = vadd.f32 %v1510_v34, %v654_v63  ;;  %v678_v4 = vadd.f32 %v1525_v60, %v658_v0 }
  0xef   :  { %v578_v62 = vadd.f32 %v577_v58, %v576_v50  ;;  %v608_v1 = vsub.f32 1.5, %v607_v61 }
  0xf0   :  { %v584_v5 = vrot.slane %v583_v28, 1  ;;  %v682_v8 = vmax.f32 %v674_v3, 0.0  ;;  %v686_v43 = vmax.f32 %v678_v4, 0.0 }
  0xf1   :  { %v588_v2 = vmul.f32 %v578_v62, %v1472_v20  ;;  %v609_v6 = vmul.f32 %v1040_v45, %v608_v1 }
  0xf2   :  { %v585_v9 = vadd.f32 %v584_v5, %v583_v28  ;;  %v700_v11 = vmul.f32 %v692_v29, %v682_v8  ;;  %v704_v14 = vmul.f32 %v692_v29, %v686_v43  ;;  %v695_v29 = vperm.slane %v1523_v19, 3 }
  0xf3   :  { %v592_v7 = vadd.f32 1e-06, %v588_v2  ;;  %v613_v10 = vsel %vm612_vm9, %v1040_v45, %v609_v6 }
  0xf4   :  { %v635_v12 = vmul.f32 %v613_v10, %v1484_v46  ;;  %v639_v52 = vmul.f32 %v613_v10, %v1486_v47  ;;  %v589_v13 = vmul.f32 %v585_v9, %v1472_v20  ;;  %708 = vst [vmem:[%s1609_s6] sm:$0xff] %v700_v11  ;;  %v693_v47 = vperm.slane %v1523_v19, 1 }
  0xf5   :  { %1041 = vrsqrt.f32 %v592_v7  ;;  %712 = vst [vmem:[%s1609_s6 + $0x20] sm:$0xff] %v704_v14  ;;  %vm620_vm11 = vweird.f32 %v592_v7 }
  0xf6   :  { %v593_v17 = vadd.f32 1e-06, %v589_v13  ;;  %v655_v18 = vmul.f32 %v1504_v27, %v635_v12  ;;  %v659_v21 = vmul.f32 %v1516_v54, %v639_v52 }
  0xf8   :  { %1043 = vrsqrt.f32 %v593_v17  ;;  %v675_v46 = vadd.f32 %v1510_v34, %v655_v18  ;;  %v679_v20 = vadd.f32 %v1525_v60, %v659_v21  ;;  %vm630_vm14 = vweird.f32 %v593_v17 }
  0xfa   :  { %v683_v24 = vmax.f32 %v675_v46, 0.0  ;;  %v687_v25 = vmax.f32 %v679_v20, 0.0 }
  0xfb   :  { %v1042_v22 = vpop.eup %1041 }
  0xfc   :  { %v615_v23 = vmul.f32 %v1042_v22, %v592_v7  ;;  %v701_v30 = vmul.f32 %v693_v47, %v683_v24  ;;  %v705_v33 = vmul.f32 %v693_v47, %v687_v25  ;;  %vm621_vm10 = vweird.f32 %v1042_v22 }
  0xfd   :  { %vm622_vm12 = vmor %vm620_vm11, %vm621_vm10 }
  0xfe   :  { %v616_v26 = vmul.f32 %v1042_v22, %v615_v23  ;;  %v1044_v35 = vpop.eup %1043  ;;  %709 = vst [vmem:[%s1609_s6 + $0x8] sm:$0xff] %v701_v30 }
  0xff   :  { %v625_v37 = vmul.f32 %v1044_v35, %v593_v17  ;;  %713 = vst [vmem:[%s1609_s6 + $0x28] sm:$0xff] %v705_v33  ;;  %vm631_vm13 = vweird.f32 %v1044_v35 }
 0x100   :  { %v617_v36 = vmul.f32 0.5, %v616_v26  ;;  %vm632_vm15 = vmor %vm630_vm14, %vm631_vm13 }
 0x101   :  { %v626_v39 = vmul.f32 %v1044_v35, %v625_v37 }
 0x102   :  { %v618_v38 = vsub.f32 1.5, %v617_v36 }
 0x103   :  { %v627_v41 = vmul.f32 0.5, %v626_v39 }
 0x104   :  { %v619_v40 = vmul.f32 %v1042_v22, %v618_v38 }
 0x105   :  { %v628_v48 = vsub.f32 1.5, %v627_v41 }
 0x106   :  { %v623_v42 = vsel %vm622_vm12, %v1042_v22, %v619_v40 }
 0x107   :  { %v636_v44 = vmul.f32 %v623_v42, %v1494_v15  ;;  %v640_v45 = vmul.f32 %v623_v42, %v1496_v16  ;;  %v629_v49 = vmul.f32 %v1044_v35, %v628_v48 }
 0x109   :  { %v656_v50 = vmul.f32 %v1504_v27, %v636_v44  ;;  %v660_v51 = vmul.f32 %v1516_v54, %v640_v45  ;;  %v633_v53 = vsel %vm632_vm15, %v1044_v35, %v629_v49 }
 0x10a   :  { %v637_v15 = vmul.f32 %v633_v53, %v1506_v31  ;;  %v641_v16 = vmul.f32 %v633_v53, %v1508_v32 }
 0x10b   :  { %v676_v55 = vadd.f32 %v1510_v34, %v656_v50  ;;  %v680_v57 = vadd.f32 %v1525_v60, %v660_v51 }
 0x10c   :  { %v657_v61 = vmul.f32 %v1504_v27, %v637_v15  ;;  %v661_v62 = vmul.f32 %v1516_v54, %v641_v16 }
 0x10d   :  { %v684_v58 = vmax.f32 %v676_v55, 0.0  ;;  %v688_v59 = vmax.f32 %v680_v57, 0.0 }
 0x10e   :  { %v677_v28 = vadd.f32 %v1510_v34, %v657_v61  ;;  %v681_v1 = vadd.f32 %v1525_v60, %v661_v62 }
 0x10f   :  { %v702_v63 = vmul.f32 %v694_v56, %v684_v58  ;;  %v706_v0 = vmul.f32 %v694_v56, %v688_v59 }
 0x110   :  { %v685_v31 = vmax.f32 %v677_v28, 0.0  ;;  %v689_v32 = vmax.f32 %v681_v1, 0.0 }
 0x111   :  { %710 = vst [vmem:[%s1609_s6 + $0x10] sm:$0xff] %v702_v63 }
 0x112   :  { %714 = vst [vmem:[%s1609_s6 + $0x30] sm:$0xff] %v706_v0  ;;  %v703_v27 = vmul.f32 %v695_v29, %v685_v31  ;;  %v707_v54 = vmul.f32 %v695_v29, %v689_v32 }
 0x114   :  { %711 = vst [vmem:[%s1609_s6 + $0x18] sm:$0xff] %v703_v27 }
 0x115   :  { %715 = vst [vmem:[%s1609_s6 + $0x38] sm:$0xff] %v707_v54 }
 0x116 PF:  { %s716_s24 = sld [smem:[#allocation3]] }
 0x11c   :  { %p970_p1 = scmp.ne.s32.totalorder %s716_s24, 0 }
 0x11e   :  { %720 = sbr.rel (%p970_p1) target bundleno = 300 (0x12c), region = 29 }
 0x123   :  { %v1048_v34 = vmov 0.0  }
 0x124   :  { %721 = vst [vmem:[%s1609_s6] sm:$0xff] %v1048_v34 }
 0x125   :  { %722 = vst [vmem:[%s1609_s6 + $0x8] sm:$0xff] %v1048_v34 }
 0x126   :  { %723 = vst [vmem:[%s1609_s6 + $0x10] sm:$0xff] %v1048_v34 }
 0x127   :  { %724 = vst [vmem:[%s1609_s6 + $0x18] sm:$0xff] %v1048_v34 }
 0x128   :  { %725 = vst [vmem:[%s1609_s6 + $0x20] sm:$0xff] %v1048_v34 }
 0x129   :  { %726 = vst [vmem:[%s1609_s6 + $0x28] sm:$0xff] %v1048_v34 }
 0x12a   :  { %727 = vst [vmem:[%s1609_s6 + $0x30] sm:$0xff] %v1048_v34 }
 0x12b   :  { %728 = vst [vmem:[%s1609_s6 + $0x38] sm:$0xff] %v1048_v34 }
 0x12c PF:  {}

</bundles_post_ra>
